<compile_context>
chip_gen: v6e
topology: v6e:2x2x1
jax: 0.10.0
libtpu: 0.0.40
codegen_flags: <defaults>
</compile_context>

<pallas_src>
import jax
import jax.numpy as jnp
from jax.experimental import pallas as pl
from jax.experimental.pallas import tpu as pltpu

# Logical sizes (PyTorch module) and lane-padded sizes (multiples of 128).
IN, HID, LAT = 784, 400, 20
IN_P, HID_P, LAT_P = 896, 512, 128
MU_OFF, LV_OFF = 0, LAT_P // 2    # mu lanes [0,20), logvar lanes [64,84) of the 128-wide head


def _round_up(n, m):
    return ((n + m - 1) // m) * m


def vae_seg_kernel(x_ref, eps_ref,
                   w1_ref, b1_ref, wenc_ref, benc_ref,
                   w3_ref, b3_ref, w4_ref, b4_ref,
                   recon_ref, muvar_ref):
    # ---- encode: h1 = relu(x @ W1 + b1) ----  (x is already bf16; MXU accumulates f32)
    h1 = jnp.dot(x_ref[...], w1_ref[...], preferred_element_type=jnp.float32) + b1_ref[...]
    h1 = jnp.maximum(h1, 0.0).astype(jnp.bfloat16)                        # [TB, 512]

    # ---- fused mu|logvar head: one lane-dense [TB, 128] tile ----
    enc = jnp.dot(h1, wenc_ref[...], preferred_element_type=jnp.float32) + benc_ref[...]
    muvar_ref[...] = enc   # store early: the output DMA overlaps the decode matmuls

    # ---- reparametrize: z = eps * exp(0.5*logvar) + mu ----
    # mu occupies lanes [0,20); logvar lanes [64,84).  eps is nonzero only in the logvar
    # lanes, so eps * exp(0.5*enc) is exactly the eps*std term (lanes 64..83), and masking
    # the upper lanes out of enc leaves the mu term (lanes 0..19).  W3 carries fc3's weight
    # duplicated at rows [0:20] and [64:84], so a single matmul sums both contributions.
    lane = jax.lax.broadcasted_iota(jnp.int32, enc.shape, 1)
    mu_term = jnp.where(lane < LV_OFF, enc, 0.0)
    z = mu_term + eps_ref[...].astype(jnp.float32) * jnp.exp(0.5 * enc)   # [TB, 128] f32

    # ---- decode: sigmoid(relu(z @ W3 + b3) @ W4 + b4) ----
    h3 = jnp.dot(z.astype(jnp.bfloat16), w3_ref[...],
                 preferred_element_type=jnp.float32) + b3_ref[...]
    h3 = jnp.maximum(h3, 0.0).astype(jnp.bfloat16)                        # [TB, 512]
    logits = jnp.dot(h3, w4_ref[...], preferred_element_type=jnp.float32) + b4_ref[...]
    recon_ref[...] = jax.nn.sigmoid(logits)                               # [TB, 896] f32


def vae_seg_forward_padded(x_p, eps_p, packed, *, tb=256):
    """Core pallas_call on pre-padded bf16 activations (the production entry point).

    x_p:   [B_pad, 896] bf16  (logical image in columns [0,784), rest zero)
    eps_p: [B_pad, 128] bf16  (N(0,1) noise in columns [64,84), rest zero)
    B_pad must be a multiple of 8.
    Returns (recon_p [B_pad, 896] f32, muvar_p [B_pad, 128] f32) -- padded; slice lazily.
    """
    B_pad = x_p.shape[0]
    assert x_p.shape == (B_pad, IN_P) and x_p.dtype == jnp.bfloat16
    assert eps_p.shape == (B_pad, LAT_P) and eps_p.dtype == jnp.bfloat16
    assert B_pad % 8 == 0

    # Batch tile: default 256 (v6e/v5e); pass tb=512 on v7x.  Keep >= 2 grid steps whenever
    # the batch allows so the "parallel" axis actually shards across both v7x TensorCores.
    TB = min(tb, B_pad)
    if B_pad >= 16 and B_pad <= TB:
        TB = _round_up(B_pad // 2, 8)
    while B_pad % TB != 0:            # TB must evenly divide the (8-aligned) padded batch
        TB -= 8

    weights = (packed["w1"], packed["b1"], packed["wenc"], packed["benc"],
               packed["w3"], packed["b3"], packed["w4"], packed["b4"])

    def act_spec(feat):
        return pl.BlockSpec((TB, feat), lambda i: (i, 0))

    def w_spec(a):
        # Whole weight resident in VMEM; constant block index -> DMA'd once and reused
        # across all batch tiles (~2.1 MB bf16 total, fine even double-buffered).
        return pl.BlockSpec(a.shape, lambda i: (0, 0))

    in_specs = [act_spec(IN_P), act_spec(LAT_P)] + [w_spec(a) for a in weights]
    out_shapes = (jax.ShapeDtypeStruct((B_pad, IN_P), jnp.float32),
                  jax.ShapeDtypeStruct((B_pad, LAT_P), jnp.float32))
    out_specs = (pl.BlockSpec((TB, IN_P), lambda i: (i, 0)),
                 pl.BlockSpec((TB, LAT_P), lambda i: (i, 0)))

    recon_p, muvar_p = pl.pallas_call(
        vae_seg_kernel,
        out_shape=out_shapes,
        grid_spec=pltpu.PrefetchScalarGridSpec(
            num_scalar_prefetch=0,
            grid=(B_pad // TB,),
            in_specs=in_specs,
            out_specs=out_specs,
        ),
        compiler_params=pltpu.CompilerParams(
            # Independent batch tiles -> shard the grid across both TensorCores on v7x.
            dimension_semantics=("parallel",),
        ),
    )(x_p, eps_p, *weights)
    return recon_p, muvar_p


def vae_seg_forward(x, eps, packed, *, tb=256):
    """Convenience wrapper: pads x/eps into the tiled bf16 layout and slices the outputs back
    to the logical widths.  For production, keep activations pre-padded (bf16, 896/128-wide)
    upstream and consume the padded outputs of vae_seg_forward_padded directly -- the pad and
    slice passes here are separate XLA kernels whose HBM traffic rivals the kernel's own.
    Returns (recon [B,784], mu [B,20], logvar [B,20])."""
    B = x.shape[0]
    B8 = _round_up(B, 8)
    TB = min(tb, B8)
    if B8 >= 16 and B8 <= TB:
        TB = _round_up(B8 // 2, 8)
    B_pad = _round_up(B, TB)

    x_p = jnp.zeros((B_pad, IN_P), jnp.bfloat16).at[:B, :IN].set(x.astype(jnp.bfloat16))
    eps_p = (jnp.zeros((B_pad, LAT_P), jnp.bfloat16)
             .at[:B, LV_OFF:LV_OFF + LAT].set(eps.astype(jnp.bfloat16)))

    recon_p, muvar_p = vae_seg_forward_padded(x_p, eps_p, packed, tb=TB)
    recon = recon_p[:B, :IN]
    mu = muvar_p[:B, MU_OFF:MU_OFF + LAT]
    logvar = muvar_p[:B, LV_OFF:LV_OFF + LAT]
    return recon, mu, logvar


def init_params(key):
    """PyTorch nn.Linear-style uniform(-1/sqrt(fan_in), 1/sqrt(fan_in)) init.
    Weights stored as [in, out] (transpose of torch's [out, in]); f32, unpadded."""
    def linear(k, fan_in, fan_out):
        kw, kb = jax.random.split(k)
        bound = 1.0 / jnp.sqrt(fan_in)
        w = jax.random.uniform(kw, (fan_in, fan_out), jnp.float32, -bound, bound)
        b = jax.random.uniform(kb, (1, fan_out), jnp.float32, -bound, bound)
        return w, b

    k1, k21, k22, k3, k4 = jax.random.split(key, 5)
    w1, b1 = linear(k1, IN, HID)
    w21, b21 = linear(k21, HID, LAT)
    w22, b22 = linear(k22, HID, LAT)
    w3, b3 = linear(k3, LAT, HID)
    w4, b4 = linear(k4, HID, IN)
    return dict(w1=w1, b1=b1, w21=w21, b21=b21, w22=w22, b22=b22,
                w3=w3, b3=b3, w4=w4, b4=b4)


def pack_params(p):
    """Zero-pad feature dims to 128-lane multiples and repack for the fused kernel:
      * wenc/benc: single 128-wide head, fc21 -> lanes [0,20), fc22 -> lanes [64,84)
      * w3: fc3's weight duplicated at rows [0:20] and [64:84] (the mu term and the eps*std
        term of z live in disjoint lane groups; one matmul sums them by linearity)
    Weights are bf16; biases stay f32 (added after the f32 MXU accumulation)."""
    w1 = jnp.zeros((IN_P, HID_P), jnp.float32).at[:IN, :HID].set(p["w1"])
    b1 = jnp.zeros((1, HID_P), jnp.float32).at[:, :HID].set(p["b1"])
    wenc = (jnp.zeros((HID_P, LAT_P), jnp.float32)
            .at[:HID, MU_OFF:MU_OFF + LAT].set(p["w21"])
            .at[:HID, LV_OFF:LV_OFF + LAT].set(p["w22"]))
    benc = (jnp.zeros((1, LAT_P), jnp.float32)
            .at[:, MU_OFF:MU_OFF + LAT].set(p["b21"])
            .at[:, LV_OFF:LV_OFF + LAT].set(p["b22"]))
    w3 = (jnp.zeros((LAT_P, HID_P), jnp.float32)
          .at[MU_OFF:MU_OFF + LAT, :HID].set(p["w3"])
          .at[LV_OFF:LV_OFF + LAT, :HID].set(p["w3"]))
    b3 = jnp.zeros((1, HID_P), jnp.float32).at[:, :HID].set(p["b3"])
    w4 = jnp.zeros((HID_P, IN_P), jnp.float32).at[:HID, :IN].set(p["w4"])
    b4 = jnp.zeros((1, IN_P), jnp.float32).at[:, :IN].set(p["b4"])
    bf = lambda a: a.astype(jnp.bfloat16)
    return dict(w1=bf(w1), b1=b1, wenc=bf(wenc), benc=benc,
                w3=bf(w3), b3=b3, w4=bf(w4), b4=b4)


if __name__ == "__main__":
    key = jax.random.PRNGKey(0)
    k_params, k_x, k_eps = jax.random.split(key, 3)

    # Small demo batch: B=12 with the default tb -> TB=8, 2 grid steps (exercises padding,
    # multi-tile pipelining and the 2-step megacore split).  Real workloads: tb=256 (v6e/v5e)
    # or tb=512 (v7x) to fill the MXU M dimension and amortize per-step overhead.
    B = 12
    params = init_params(k_params)
    packed = pack_params(params)
    x = jax.random.uniform(k_x, (B, IN), jnp.float32)        # flattened 28x28 "images"
    # torch draws eps internally; here it is passed in explicitly (bf16) for determinism.
    # TODO(synk): optionally draw eps in-kernel via pltpu.prng_seed/prng_random_bits to match
    #             torch's internal sampling and drop the eps input DMA entirely.
    eps = jax.random.normal(k_eps, (B, LAT), jnp.float32).astype(jnp.bfloat16)

    recon, mu, logvar = vae_seg_forward(x, eps, packed)
    jax.block_until_ready((recon, mu, logvar))

    # pure-JAX f32 reference (unpadded, un-fused params; same bf16-rounded eps values)
    eps_f = eps.astype(jnp.float32)
    h1 = jnp.maximum(x @ params["w1"] + params["b1"], 0.0)
    mu_ref = h1 @ params["w21"] + params["b21"]
    lv_ref = h1 @ params["w22"] + params["b22"]
    z = eps_f * jnp.exp(0.5 * lv_ref) + mu_ref
    h3 = jnp.maximum(z @ params["w3"] + params["b3"], 0.0)
    rec_ref = jax.nn.sigmoid(h3 @ params["w4"] + params["b4"])

    assert recon.shape == (B, IN) and mu.shape == (B, LAT) and logvar.shape == (B, LAT)
    # bf16 weights/activations -> slightly looser tolerance than a pure-f32 kernel
    assert jnp.allclose(recon, rec_ref, atol=2e-2)
    assert jnp.allclose(mu, mu_ref, atol=2e-2)
    assert jnp.allclose(logvar, lv_ref, atol=2e-2)

    print("KERNEL_OK")
</pallas_src>

<mosaic_0001>
module attributes {stable_mosaic.version = 11 : i64} {
  func.func @vae_seg_kernel(%arg0: i32, %arg1: memref<8x896xbf16, #tpu.memory_space<vmem>>, %arg2: memref<8x128xbf16, #tpu.memory_space<vmem>>, %arg3: memref<896x512xbf16, #tpu.memory_space<vmem>>, %arg4: memref<1x512xf32, #tpu.memory_space<vmem>>, %arg5: memref<512x128xbf16, #tpu.memory_space<vmem>>, %arg6: memref<1x128xf32, #tpu.memory_space<vmem>>, %arg7: memref<128x512xbf16, #tpu.memory_space<vmem>>, %arg8: memref<1x512xf32, #tpu.memory_space<vmem>>, %arg9: memref<512x896xbf16, #tpu.memory_space<vmem>>, %arg10: memref<1x896xf32, #tpu.memory_space<vmem>>, %arg11: memref<8x896xf32, #tpu.memory_space<vmem>>, %arg12: memref<8x128xf32, #tpu.memory_space<vmem>>) attributes {dimension_semantics = [#tpu.dimension_semantics<parallel>], iteration_bounds = array<i64: 2>, scalar_prefetch = 0 : i64, scratch_operands = 0 : i64, tpu.core_type = #tpu.core_type<tc>, window_params = [{transform_indices = @transform_0, window_bounds = array<i64: 8, 896>}, {transform_indices = @transform_1, window_bounds = array<i64: 8, 128>}, {pipeline_mode = #tpu.pipeline_mode<synchronous>, transform_indices = @transform_2, window_bounds = array<i64: 896, 512>}, {pipeline_mode = #tpu.pipeline_mode<synchronous>, transform_indices = @transform_3, window_bounds = array<i64: 1, 512>}, {pipeline_mode = #tpu.pipeline_mode<synchronous>, transform_indices = @transform_4, window_bounds = array<i64: 512, 128>}, {pipeline_mode = #tpu.pipeline_mode<synchronous>, transform_indices = @transform_5, window_bounds = array<i64: 1, 128>}, {pipeline_mode = #tpu.pipeline_mode<synchronous>, transform_indices = @transform_6, window_bounds = array<i64: 128, 512>}, {pipeline_mode = #tpu.pipeline_mode<synchronous>, transform_indices = @transform_7, window_bounds = array<i64: 1, 512>}, {pipeline_mode = #tpu.pipeline_mode<synchronous>, transform_indices = @transform_8, window_bounds = array<i64: 512, 896>}, {pipeline_mode = #tpu.pipeline_mode<synchronous>, transform_indices = @transform_9, window_bounds = array<i64: 1, 896>}, {transform_indices = @transform_10, window_bounds = array<i64: 8, 896>}, {transform_indices = @transform_11, window_bounds = array<i64: 8, 128>}]} {
    %c0 = arith.constant 0 : index
    %c0_0 = arith.constant 0 : index
    %0 = vector.load %arg1[%c0, %c0_0] : memref<8x896xbf16, #tpu.memory_space<vmem>>, vector<8x896xbf16>
    %c0_1 = arith.constant 0 : index
    %c0_2 = arith.constant 0 : index
    %1 = vector.load %arg3[%c0_1, %c0_2] : memref<896x512xbf16, #tpu.memory_space<vmem>>, vector<896x512xbf16>
    %cst = arith.constant dense<0.000000e+00> : vector<8x512xf32>
    %2 = tpu.matmul %0, %1, %cst {dimension_numbers = #tpu.dot_dimension_numbers<[1], [0], [0], [1], [0, 0, 1, 1], [], []>} : vector<8x896xbf16>, vector<896x512xbf16>, vector<8x512xf32> -> vector<8x512xf32>
    %c0_3 = arith.constant 0 : index
    %c0_4 = arith.constant 0 : index
    %3 = vector.load %arg4[%c0_3, %c0_4] : memref<1x512xf32, #tpu.memory_space<vmem>>, vector<1x512xf32>
    %4 = vector.broadcast %3 : vector<1x512xf32> to vector<8x512xf32>
    %5 = arith.addf %2, %4 : vector<8x512xf32>
    %cst_5 = arith.constant 0.000000e+00 : f32
    %6 = vector.broadcast %cst_5 : f32 to vector<8x512xf32>
    %7 = arith.maximumf %5, %6 : vector<8x512xf32>
    %8 = arith.truncf %7 : vector<8x512xf32> to vector<8x512xbf16>
    %c0_6 = arith.constant 0 : index
    %c0_7 = arith.constant 0 : index
    %9 = vector.load %arg5[%c0_6, %c0_7] : memref<512x128xbf16, #tpu.memory_space<vmem>>, vector<512x128xbf16>
    %cst_8 = arith.constant dense<0.000000e+00> : vector<8x128xf32>
    %10 = tpu.matmul %8, %9, %cst_8 {dimension_numbers = #tpu.dot_dimension_numbers<[1], [0], [0], [1], [0, 0, 1, 1], [], []>} : vector<8x512xbf16>, vector<512x128xbf16>, vector<8x128xf32> -> vector<8x128xf32>
    %c0_9 = arith.constant 0 : index
    %c0_10 = arith.constant 0 : index
    %11 = vector.load %arg6[%c0_9, %c0_10] : memref<1x128xf32, #tpu.memory_space<vmem>>, vector<1x128xf32>
    %12 = vector.broadcast %11 : vector<1x128xf32> to vector<8x128xf32>
    %13 = arith.addf %10, %12 : vector<8x128xf32>
    %c0_11 = arith.constant 0 : index
    %c0_12 = arith.constant 0 : index
    %14 = vector.load %arg12[%c0_11, %c0_12] : memref<8x128xf32, #tpu.memory_space<vmem>>, vector<8x128xf32>
    tpu.vector_store %arg12[%c0_11, %c0_12], %13 {strides = array<i32>} : memref<8x128xf32, #tpu.memory_space<vmem>>, vector<8x128xf32>,
    %15 = tpu.iota {dimensions = array<i32: 1>} : vector<8x128xi32>
    %c64_i32 = arith.constant 64 : i32
    %16 = vector.broadcast %c64_i32 : i32 to vector<8x128xi32>
    %17 = arith.cmpi slt, %15, %16 : vector<8x128xi32>
    %cst_13 = arith.constant 0.000000e+00 : f32
    %18 = vector.broadcast %cst_13 : f32 to vector<8x128xf32>
    %19 = arith.select %17, %13, %18 : vector<8x128xi1>, vector<8x128xf32>
    %c0_14 = arith.constant 0 : index
    %c0_15 = arith.constant 0 : index
    %20 = vector.load %arg2[%c0_14, %c0_15] : memref<8x128xbf16, #tpu.memory_space<vmem>>, vector<8x128xbf16>
    %21 = arith.extf %20 : vector<8x128xbf16> to vector<8x128xf32>
    %cst_16 = arith.constant 5.000000e-01 : f32
    %22 = vector.broadcast %cst_16 : f32 to vector<8x128xf32>
    %23 = arith.mulf %22, %13 : vector<8x128xf32>
    %24 = math.exp %23 : vector<8x128xf32>
    %25 = arith.mulf %21, %24 : vector<8x128xf32>
    %26 = arith.addf %19, %25 : vector<8x128xf32>
    %27 = arith.truncf %26 : vector<8x128xf32> to vector<8x128xbf16>
    %c0_17 = arith.constant 0 : index
    %c0_18 = arith.constant 0 : index
    %28 = vector.load %arg7[%c0_17, %c0_18] : memref<128x512xbf16, #tpu.memory_space<vmem>>, vector<128x512xbf16>
    %cst_19 = arith.constant dense<0.000000e+00> : vector<8x512xf32>
    %29 = tpu.matmul %27, %28, %cst_19 {dimension_numbers = #tpu.dot_dimension_numbers<[1], [0], [0], [1], [0, 0, 1, 1], [], []>} : vector<8x128xbf16>, vector<128x512xbf16>, vector<8x512xf32> -> vector<8x512xf32>
    %c0_20 = arith.constant 0 : index
    %c0_21 = arith.constant 0 : index
    %30 = vector.load %arg8[%c0_20, %c0_21] : memref<1x512xf32, #tpu.memory_space<vmem>>, vector<1x512xf32>
    %31 = vector.broadcast %30 : vector<1x512xf32> to vector<8x512xf32>
    %32 = arith.addf %29, %31 : vector<8x512xf32>
    %cst_22 = arith.constant 0.000000e+00 : f32
    %33 = vector.broadcast %cst_22 : f32 to vector<8x512xf32>
    %34 = arith.maximumf %32, %33 : vector<8x512xf32>
    %35 = arith.truncf %34 : vector<8x512xf32> to vector<8x512xbf16>
    %c0_23 = arith.constant 0 : index
    %c0_24 = arith.constant 0 : index
    %36 = vector.load %arg9[%c0_23, %c0_24] : memref<512x896xbf16, #tpu.memory_space<vmem>>, vector<512x896xbf16>
    %cst_25 = arith.constant dense<0.000000e+00> : vector<8x896xf32>
    %37 = tpu.matmul %35, %36, %cst_25 {dimension_numbers = #tpu.dot_dimension_numbers<[1], [0], [0], [1], [0, 0, 1, 1], [], []>} : vector<8x512xbf16>, vector<512x896xbf16>, vector<8x896xf32> -> vector<8x896xf32>
    %c0_26 = arith.constant 0 : index
    %c0_27 = arith.constant 0 : index
    %38 = vector.load %arg10[%c0_26, %c0_27] : memref<1x896xf32, #tpu.memory_space<vmem>>, vector<1x896xf32>
    %39 = vector.broadcast %38 : vector<1x896xf32> to vector<8x896xf32>
    %40 = arith.addf %37, %39 : vector<8x896xf32>
    %41 = arith.negf %40 : vector<8x896xf32>
    %42 = math.exp %41 : vector<8x896xf32>
    %cst_28 = arith.constant 1.000000e+00 : f32
    %43 = vector.broadcast %cst_28 : f32 to vector<8x896xf32>
    %44 = arith.addf %43, %42 : vector<8x896xf32>
    %45 = arith.divf %43, %44 : vector<8x896xf32>
    %c0_29 = arith.constant 0 : index
    %c0_30 = arith.constant 0 : index
    %46 = vector.load %arg11[%c0_29, %c0_30] : memref<8x896xf32, #tpu.memory_space<vmem>>, vector<8x896xf32>
    tpu.vector_store %arg11[%c0_29, %c0_30], %45 {strides = array<i32>} : memref<8x896xf32, #tpu.memory_space<vmem>>, vector<8x896xf32>,
    return
  }
  func.func @transform_0(%arg0: i32) -> (i32, i32) {
    %c0_i32 = arith.constant 0 : i32
    %c0_i32_0 = arith.constant 0 : i32
    return %arg0, %c0_i32 : i32, i32
  }
  func.func @transform_1(%arg0: i32) -> (i32, i32) {
    %c0_i32 = arith.constant 0 : i32
    %c0_i32_0 = arith.constant 0 : i32
    return %arg0, %c0_i32 : i32, i32
  }
  func.func @transform_2(%arg0: i32) -> (i32, i32) {
    %c0_i32 = arith.constant 0 : i32
    %c0_i32_0 = arith.constant 0 : i32
    %c0_i32_1 = arith.constant 0 : i32
    return %c0_i32, %c0_i32_0 : i32, i32
  }
  func.func @transform_3(%arg0: i32) -> (i32, i32) {
    %c0_i32 = arith.constant 0 : i32
    %c0_i32_0 = arith.constant 0 : i32
    %c0_i32_1 = arith.constant 0 : i32
    return %c0_i32, %c0_i32_0 : i32, i32
  }
  func.func @transform_4(%arg0: i32) -> (i32, i32) {
    %c0_i32 = arith.constant 0 : i32
    %c0_i32_0 = arith.constant 0 : i32
    %c0_i32_1 = arith.constant 0 : i32
    return %c0_i32, %c0_i32_0 : i32, i32
  }
  func.func @transform_5(%arg0: i32) -> (i32, i32) {
    %c0_i32 = arith.constant 0 : i32
    %c0_i32_0 = arith.constant 0 : i32
    %c0_i32_1 = arith.constant 0 : i32
    return %c0_i32, %c0_i32_0 : i32, i32
  }
  func.func @transform_6(%arg0: i32) -> (i32, i32) {
    %c0_i32 = arith.constant 0 : i32
    %c0_i32_0 = arith.constant 0 : i32
    %c0_i32_1 = arith.constant 0 : i32
    return %c0_i32, %c0_i32_0 : i32, i32
  }
  func.func @transform_7(%arg0: i32) -> (i32, i32) {
    %c0_i32 = arith.constant 0 : i32
    %c0_i32_0 = arith.constant 0 : i32
    %c0_i32_1 = arith.constant 0 : i32
    return %c0_i32, %c0_i32_0 : i32, i32
  }
  func.func @transform_8(%arg0: i32) -> (i32, i32) {
    %c0_i32 = arith.constant 0 : i32
    %c0_i32_0 = arith.constant 0 : i32
    %c0_i32_1 = arith.constant 0 : i32
    return %c0_i32, %c0_i32_0 : i32, i32
  }
  func.func @transform_9(%arg0: i32) -> (i32, i32) {
    %c0_i32 = arith.constant 0 : i32
    %c0_i32_0 = arith.constant 0 : i32
    %c0_i32_1 = arith.constant 0 : i32
    return %c0_i32, %c0_i32_0 : i32, i32
  }
  func.func @transform_10(%arg0: i32) -> (i32, i32) {
    %c0_i32 = arith.constant 0 : i32
    %c0_i32_0 = arith.constant 0 : i32
    return %arg0, %c0_i32 : i32, i32
  }
  func.func @transform_11(%arg0: i32) -> (i32, i32) {
    %c0_i32 = arith.constant 0 : i32
    %c0_i32_0 = arith.constant 0 : i32
    return %arg0, %c0_i32 : i32, i32
  }
}

</mosaic_0001>

<bundles_post_ra>
// kernel: tpu_custom_call.1
= control target key start
LH: loop header
LB: loop body
LE: loop exit
PB: predicated region body
PF: predicated region fallthrough
CT: control target
= control target key end

     0   :  { %s7254_s0 = inlined_call_operand.hbm [shape: bf16[16,896], index: 0, kind: input, shape index: {}]   ;;  %s7255_s1 = inlined_call_operand.hbm [shape: bf16[16,128], index: 1, kind: input, shape index: {}]   ;;  %s7256_s2 = inlined_call_operand.hbm [shape: bf16[896,512], index: 2, kind: input, shape index: {}]   ;;  %s7257_s3 = inlined_call_operand.vmem [shape: f32[1,512], index: 3, kind: input, shape index: {}]   ;;  %s7258_s4 = inlined_call_operand.hbm [shape: bf16[512,128], index: 4, kind: input, shape index: {}]   ;;  %s7259_s5 = inlined_call_operand.vmem [shape: f32[1,128], index: 5, kind: input, shape index: {}]   ;;  %s7260_s6 = inlined_call_operand.hbm [shape: bf16[128,512], index: 6, kind: input, shape index: {}]   ;;  %s7261_s7 = inlined_call_operand.hbm [shape: f32[1,512], index: 7, kind: input, shape index: {}]   ;;  %s7262_s8 = inlined_call_operand.hbm [shape: bf16[512,896], index: 8, kind: input, shape index: {}]   ;;  %s7263_s9 = inlined_call_operand.vmem [shape: f32[1,896], index: 9, kind: input, shape index: {}]   ;;  %s7264_s10 = inlined_call_operand.hbm [shape: f32[16,896], index: 10, kind: output, shape index: {0}]   ;;  %s7265_s11 = inlined_call_operand.hbm [shape: f32[16,128], index: 11, kind: output, shape index: {1}]  }
   0x1   :  { %7270 = sst [smem:[#allocation25_spill]] %s7254_s0 }
   0x2   :  { %7271 = sst [smem:[#allocation26_spill]] %s7256_s2 }
   0x3   :  { %7272 = sst [smem:[#allocation27_spill]] %s7258_s4 }
   0x4   :  { %7273 = sst [smem:[#allocation28_spill]] %s7260_s6 }
   0x5   :  { %7274 = sst [smem:[#allocation29_spill]] %s7261_s7 }
   0x6   :  { %7275 = sst [smem:[#allocation30_spill]] %s7262_s8 }
   0x7   :  { %17 = vsyncpa [#allocation3], 0 }
   0x8   :  { %19 = vsyncpa [#allocation3 + $0x1], 0 }
   0x9   :  { %20 = vsyncpa [#allocation6], 0 }
   0xa   :  { %22 = vsyncpa [#allocation6 + $0x1], 0 }
   0xb   :  { %23 = vsyncpa [#allocation9], 0 }
   0xc   :  { %24 = vsyncpa [#allocation12], 0 }
   0xd   :  { %25 = vsyncpa [#allocation4], 0 }
   0xe   :  { %27 = vsyncpa [#allocation4 + $0x1], 0 }
   0xf   :  { %28 = vsyncpa [#allocation16], 0 }
  0x10   :  { %30 = vsyncpa [#allocation16 + $0x1], 0  ;;  %s6844_s17 = smov 0   ;;  %s6846_s18 = smov 0  }
  0x11   :  { %s6848_s19 = smov 0   ;;  %s6850_s20 = smov 0  }
  0x12 LB: > { %s6768_s21 = smov [#allocation7]   ;;  %s6865_s23 = sadd.s32 4294967295, %s6766_s20   ;;  %s6766_s20 = sphi %s6850_s20, %s7306_s20   ;;  %s6762_s19 = sphi %s6848_s19, %s7305_s19   ;;  %s6758_s18 = sphi %s6846_s18, %s7304_s18   ;;  %s6754_s17 = sphi %s6844_s17, %s7303_s17  }
  0x13   : > { %s325_s22 = sshll.u32 %s6768_s21, 4  ;;  %p4939_p0 = scmp.ge.s32.totalorder %s6766_s20, 1  ;;  %s326_s22 = int_to_ptr.vmem [resolvable:$true] %s325_s22 }
  0x14   : > { %p7266_p1 = scmp.eq.s32.totalorder %s6865_s23, 0  ;;  %p313_p2 = scmp.lt.s32.totalorder %s6766_s20, 3 }
  0x15   : > { %s6769_s25 = smov [#allocation8]   ;;  %s6770_s28 = smov [#allocation11]  }
  0x16   : > { %p6870_p3 = pnand %p4939_p0, %p313_p2  ;;  %s341_s26 = sshll.u32 %s6769_s25, 4  ;;  %s6883_s26 = int_to_ptr.vmem [resolvable:$true] %s341_s26 }
  0x17   : > { %s6885_s29 = sshll.u32 %s6770_s28, 4  ;;  %s6481_s12 = scalar_lea.vmem %s326_s22, 28672  ;;  %s372_s29 = int_to_ptr.vmem [resolvable:$true] %s6885_s29 }
  0x18   : > { %s7276_s24 = scalar_select %p6870_p3, 1, 0 }
  0x19   : > { %p5610_p5 = pneg %p6870_p3  ;;  %p6482_p8 = scmp.ne.s32.totalorder %s326_s22, %s6481_s12 }
  0x1a   : > { %p6489_p11 = scmp.lt.s32.totalorder %s326_s22, %s326_s22  ;;  %p6490_p12 = scmp.lt.s32.totalorder %s6481_s12, %s6481_s12 }
  0x1b   : > { %p6879_p6 = pnand %p5610_p5, %p7266_p1 }
  0x1c   : > { %p6491_p13 = por %p6490_p12, %p6489_p11 }
  0x1d   : > { %p6889_p7 = pneg %p6879_p6 }
  0x1f   : > { %p6484_p9 = pnand %p6482_p8, %p6889_p7 }
  0x21   : > { %p6485_p10 = pneg %p6484_p9 }
  0x23   : > { %p6492_p0 = pnand %p6491_p13, %p6485_p10 }
  0x25   : > { %6495 = shalt.err (!%p6492_p0)
}
  0x26   : > { %s6771_s13 = smov 256   ;;  %s6772_s14 = smov 16  }
  0x27   : > { %s7279_s2 = sld [smem:[#allocation26_spill]]  ;;  %s6507_s21 = scalar_lea.vmem %s6883_s26, 4096 }
  0x28   : > { %p6508_p2 = scmp.ne.s32.totalorder %s6883_s26, %s6507_s21  ;;  %p6515_p9 = scmp.lt.s32.totalorder %s6883_s26, %s6883_s26 }
  0x29   : > { %p6516_p10 = scmp.lt.s32.totalorder %s6507_s21, %s6507_s21 }
  0x2a   : > { %p6510_p5 = pnand %p6508_p2, %p6889_p7 }
  0x2b   : > { %p6517_p11 = por %p6516_p10, %p6515_p9 }
  0x2c   : > { %p6511_p8 = pneg %p6510_p5 }
  0x2d   : > { %5613 = dma.hbm_to_vmem [thread:$0]  (!%p6879_p6), %s7279_s2, 28672, %s326_s22, [#allocation6], %s6771_s13, %s6771_s13, %s6772_s14  }
  0x2e   : > { %p6518_p12 = pnand %p6517_p11, %p6511_p8 }
  0x30   : > { %6521 = shalt.err (!%p6518_p12)
}
  0x31   : > { %s6773_s25 = smov 64   ;;  %s6774_s28 = smov 4  }
  0x32   : > { %s7280_s4 = sld [smem:[#allocation27_spill]]  ;;  %s6533_s15 = scalar_lea.vmem %s372_s29, 64 }
  0x33   : > { %p6534_p13 = scmp.ne.s32.totalorder %s372_s29, %s6533_s15  ;;  %p6541_p5 = scmp.lt.s32.totalorder %s372_s29, %s372_s29 }
  0x34   : > { %p6542_p8 = scmp.lt.s32.totalorder %s6533_s15, %s6533_s15 }
  0x35   : > { %p6536_p0 = pnand %p6534_p13, %p6889_p7 }
  0x36   : > { %p6543_p9 = por %p6542_p8, %p6541_p5 }
  0x37   : > { %p6537_p2 = pneg %p6536_p0 }
  0x38   : > { %5616 = dma.hbm_to_vmem [thread:$0]  (!%p6879_p6), %s7280_s4, 4096, %s6883_s26, [#allocation9], %s6773_s25, %s6773_s25, %s6774_s28  }
  0x39   : > { %p6544_p10 = pnand %p6543_p9, %p6537_p2 }
  0x3b   : > { %6547 = shalt.err (!%p6544_p10)
}
  0x3c   : > { %s7281_s7 = sld [smem:[#allocation29_spill]]  ;;  %s6775_s12 = smov [#allocation10]  }
  0x3d   : > { %s357_s26 = sshll.u32 %s6775_s12, 4  ;;  %s6776_s25 = smov [#allocation13]   ;;  %s358_s26 = int_to_ptr.vmem [resolvable:$true] %s357_s26 }
  0x3e   : > { %s381_s28 = sshll.u32 %s6776_s25, 4  ;;  %s6559_s22 = scalar_lea.vmem %s358_s26, 4096  ;;  %s382_s28 = int_to_ptr.vmem [resolvable:$true] %s381_s28 }
  0x3f   : > { %p6560_p11 = scmp.ne.s32.totalorder %s358_s26, %s6559_s22  ;;  %p6567_p0 = scmp.lt.s32.totalorder %s358_s26, %s358_s26 }
  0x40   : > { %p6568_p2 = scmp.lt.s32.totalorder %s6559_s22, %s6559_s22 }
  0x41   : > { %p6562_p12 = pnand %p6560_p11, %p6889_p7 }
  0x42   : > { %5622 = dma.hbm_to_vmem [thread:$0]  (!%p6879_p6), %s7281_s7, 64, %s372_s29, [#allocation12]  }
  0x43   : > { %p6563_p13 = pneg %p6562_p12  ;;  %p6569_p5 = por %p6568_p2, %p6567_p0 }
  0x45   : > { %p6570_p8 = pnand %p6569_p5, %p6563_p13 }
  0x47   : > { %6573 = shalt.err (!%p6570_p8)
}
  0x48   : > { %s7282_s6 = sld [smem:[#allocation28_spill]]  ;;  %s6585_s16 = scalar_lea.vmem %s382_s28, 28672 }
  0x49   : > { %p6586_p9 = scmp.ne.s32.totalorder %s382_s28, %s6585_s16  ;;  %p6593_p12 = scmp.lt.s32.totalorder %s382_s28, %s382_s28 }
  0x4a   : > { %p6594_p0 = scmp.lt.s32.totalorder %s6585_s16, %s6585_s16 }
  0x4b   : > { %p6588_p10 = pnand %p6586_p9, %p6889_p7 }
  0x4c   : > { %p6595_p13 = por %p6594_p0, %p6593_p12 }
  0x4d   : > { %p6589_p11 = pneg %p6588_p10 }
  0x4e   : > { %5619 = dma.hbm_to_vmem [thread:$0]  (!%p6879_p6), %s7282_s6, 4096, %s358_s26, [#allocation9], %s6771_s13, %s6771_s13, %s6772_s14  }
  0x4f   : > { %p6596_p2 = pnand %p6595_p13, %p6589_p11 }
  0x51   : > { %6599 = shalt.err (!%p6596_p2)
}
  0x52   : > { %s6777_s21 = smov 448   ;;  %s6778_s30 = smov 28  }
  0x53   : > { %s7283_s8 = sld [smem:[#allocation30_spill]]  ;;  %s4938_s12 = sadd.s32 4294967294, %s6766_s20  }
  0x54   : > { %s6942_s26 = sadd.s32 1, %s6766_s20   ;;  %s43_s25 = sadd.s32 1, %s6762_s19 }
  0x55   : > { %s40_s22 = ssub.s32 %s6766_s20, %s6942_s26  ;;  %p50_p7 = scmp.ne.s32.totalorder %s6762_s19, %s6758_s18 }
  0x56   : > { %p41_p5 = scmp.eq.s32.totalorder %s40_s22, 0  ;;  %p51_p8 = scmp.eq.s32.totalorder %s6766_s20, 0 }
  0x57   : > { %p56_p9 = scmp.ne.s32.totalorder %s6758_s18, %s6754_s17  ;;  %p274_p10 = scmp.eq.s32.totalorder %s6865_s23, 1 }
  0x58   : > { %s6954_s27 = scalar_select %p41_p5, %s6762_s19, %s43_s25  }
  0x59   : > { %5625 = dma.hbm_to_vmem [thread:$0]  (!%p6879_p6), %s7283_s8, 28672, %s382_s28, [#allocation12], %s6777_s21, %s6777_s21, %s6778_s30  }
  0x5a   : > { %7284 = sst [smem:[#allocation24_spill]] %s6954_s27  ;;  %p52_p11 = por %p51_p8, %p50_p7 }
  0x5b   : > { %p6958_p12 = por %p7266_p1, %p56_p9  ;;  %p6962_p6 = por %p274_p10, %p50_p7 }
  0x5c   : > { %p280_p0 = scmp.eq.s32.totalorder %s4938_s12, 1  ;;  %p5645_p13 = scmp.lt.s32.totalorder %s6766_s20, 2 }
  0x5d   : > { %s7285_s28 = scalar_select %p6958_p12, 1, 0 }
  0x5e   : > { %s7286_s29 = scalar_select %p6962_p6, 1, 0 }
  0x5f   : > { %s6968_s15 = sand.u32 1, %s6762_s19   ;;  %p6970_p2 = por %p280_p0, %p56_p9 }
  0x60   : > { %s5577_s21 = smul.u32 28, %s6968_s15  ;;  %p6975_p5 = pnand %p5645_p13, %p52_p11 }
  0x61   : > { %s7287_s16 = scalar_select %p6970_p2, 1, 0 }
  0x62   : > { %s5578_s13 = smul.u32 448, %s6766_s20  ;;  %s7289_s0 = sld [smem:[#allocation25_spill]] }
  0x63   : > { %s402_s2 = scalar_lea.vmem [#allocation2], %s5577_s21  ;;  %s399_s6 = scalar_lea.sflag [#allocation3], %s6968_s15 }
  0x64   : > { %s410_s4 = sshll.u32 %s402_s2, 4  ;;  %p6602_p8 = pneg %p6975_p5  ;;  %s411_s4 = int_to_ptr.vmem [resolvable:$true] %s410_s4 }
  0x68   : > { %s6984_s22 = scalar_lea.hbm %s7289_s0, %s5578_s13  ;;  %s6605_s13 = scalar_lea.hbm %s7289_s0, 896 }
  0x69   : > { %s6600_s7 = scalar_lea.hbm %s6984_s22, 448  ;;  %p6606_p11 = scmp.lt.s32.totalorder %s6984_s22, %s7289_s0 }
  0x6a   : > { %p6601_p7 = scmp.ne.s32.totalorder %s6984_s22, %s6600_s7  ;;  %p6607_p0 = scmp.lt.s32.totalorder %s6605_s13, %s6600_s7 }
  0x6c   : > { %p6603_p9 = pnand %p6602_p8, %p6601_p7  ;;  %p6608_p13 = por %p6607_p0, %p6606_p11 }
  0x6e   : > { %p6604_p10 = pneg %p6603_p9 }
  0x70   : > { %p6609_p4 = pnand %p6608_p13, %p6604_p10 }
  0x72   : > { %6612 = shalt.err (!%p6609_p4)
}
  0x73   : > { %s6613_s2 = scalar_lea.vmem %s411_s4, 448  ;;  %s6779_s21 = smov [#allocation2]  }
  0x74   : > { %p6614_p1 = scmp.ne.s32.totalorder %s411_s4, %s6613_s2  ;;  %s6618_s27 = sshll.u32 %s6779_s21, 4  ;;  %s6619_s27 = int_to_ptr.vmem [resolvable:$false] %s6618_s27 }
  0x75   : > { %s6620_s8 = scalar_lea.vmem %s6619_s27, 896  ;;  %p6621_p9 = scmp.lt.s32.totalorder %s411_s4, %s6619_s27 }
  0x76   : > { %p6616_p2 = pnand %p6614_p1, %p6602_p8  ;;  %p6622_p6 = scmp.lt.s32.totalorder %s6620_s8, %s6613_s2 }
  0x78   : > { %p6617_p7 = pneg %p6616_p2  ;;  %p6623_p12 = por %p6622_p6, %p6621_p9 }
  0x7a   : > { %p6624_p3 = pnand %p6623_p12, %p6617_p7 }
  0x7c   : > { %6627 = shalt.err (!%p6624_p3)
}
  0x7d   : > { %5629 = dma.hbm_to_vmem [thread:$0]  (!%p6975_p5), %s6984_s22, 448, %s411_s4, %s399_s6  }
  0x7e   : > { %s4947_s7 = sshll.u32 %s6968_s15, 2  ;;  %s4948_s14 = sshll.u32 %s6766_s20, 6 }
  0x7f   : > { %s7012_s12 = scalar_lea.hbm %s7255_s1, %s4948_s14  ;;  %s421_s27 = scalar_lea.vmem [#allocation5], %s4947_s7 }
  0x80   : > { %s428_s2 = sshll.u32 %s421_s27, 4  ;;  %s7290_s21 = sand.u32 1, %s6766_s20   ;;  %s429_s2 = int_to_ptr.vmem [resolvable:$true] %s428_s2 }
  0x81   : > { %s418_s8 = scalar_lea.sflag [#allocation6], %s7290_s21  ;;  %s6628_s0 = scalar_lea.hbm %s7012_s12, 64 }
  0x82   : > { %p6629_p1 = scmp.ne.s32.totalorder %s7012_s12, %s6628_s0  ;;  %s6633_s15 = scalar_lea.hbm %s7255_s1, 128 }
  0x83   : > { %p6634_p12 = scmp.lt.s32.totalorder %s7012_s12, %s7255_s1  ;;  %p6635_p6 = scmp.lt.s32.totalorder %s6633_s15, %s6628_s0 }
  0x84   : > { %p6631_p3 = pnand %p6629_p1, %p6602_p8 }
  0x85   : > { %p6636_p2 = por %p6635_p6, %p6634_p12 }
  0x86   : > { %p6632_p4 = pneg %p6631_p3 }
  0x88   : > { %p6637_p10 = pnand %p6636_p2, %p6632_p4 }
  0x8a   : > { %6640 = shalt.err (!%p6637_p10)
}
  0x8b   : > { %s6641_s7 = scalar_lea.vmem %s429_s2, 64  ;;  %s6780_s13 = smov [#allocation5]  }
  0x8c   : > { %p6642_p11 = scmp.ne.s32.totalorder %s429_s2, %s6641_s7  ;;  %s6646_s25 = sshll.u32 %s6780_s13, 4  ;;  %s6647_s25 = int_to_ptr.vmem [resolvable:$false] %s6646_s25 }
  0x8d   : > { %s6648_s27 = scalar_lea.vmem %s6647_s25, 128  ;;  %p6649_p7 = scmp.lt.s32.totalorder %s429_s2, %s6647_s25 }
  0x8e   : > { %p6644_p0 = pnand %p6642_p11, %p6602_p8  ;;  %p6650_p9 = scmp.lt.s32.totalorder %s6648_s27, %s6641_s7 }
  0x90   : > { %p6645_p13 = pneg %p6644_p0  ;;  %p6651_p1 = por %p6650_p9, %p6649_p7 }
  0x92   : > { %p6652_p3 = pnand %p6651_p1, %p6645_p13 }
  0x94   : > { %6655 = shalt.err (!%p6652_p3)
}
  0x95   : > { %5632 = dma.hbm_to_vmem [thread:$0]  (!%p6975_p5), %s7012_s12, 64, %s429_s2, %s418_s8  }
  0x96   : > { %p7291_p4 = scmp.ne.s32.totalorder %s7276_s24, 0 }
  0x97   : > { %s7037_s0 = sand.u32 (!%p7291_p4), 1, %s6758_s18   ;;  %p7292_p8 = scmp.ne.s32.totalorder (!%p7291_p4), %s7285_s28, 0 }
  0x98   : > { %437 = sbr.rel (%p7291_p4) target bundleno = 1432 (0x598), region = 60  ;;  %s440_s4 = scalar_lea.sflag (!%p7291_p4), [#allocation3], %s7037_s0 }
  0x99   : > { %s5579_s21 = smul.u32 (!%p7291_p4), 28, %s7037_s0 }
  0x9b   : > { %s7041_s6 = scalar_lea.vmem (!%p7291_p4), [#allocation2], %s5579_s21 }
  0x9d   : > { %6725 = dma.done.wait (%p7292_p8), %s440_s4, 448  }
  0x9e   : > { %6727 = vsyncadd (%p7292_p8), %s440_s4, 4294966848  ;;  %s448_s24 = sand.u32 1, %s6865_s23   ;;  %s4950_s30 = sshll.u32 %s7037_s0, 2 }
  0x9f   : > { %s449_s12 = scalar_lea.sflag [#allocation6], %s448_s24  ;;  %s7049_s2 = scalar_lea.vmem [#allocation5], %s4950_s30 }
  0xa0   : > { %6729 = dma.done.wait (%p7292_p8), %s449_s12, 64  }
  0xa1   : > { %6731 = vsyncadd (%p7292_p8), %s449_s12, 4294967232  ;;  %p7293_p5 = scmp.eq.s32.totalorder %s6865_s23, 0 }
  0xa3   : > { %6733 = dma.done.wait (%p7293_p5), [#allocation6], 28672   ;;  %p7294_p12 = pmov %p7293_p5 }
  0xa4   : > { %p7295_p6 = pmov %p7293_p5 }
  0xa5   : > { %6735 = vsyncadd (%p7294_p12), [#allocation6], 4294938624 }
  0xa6   : > { %6737 = dma.done.wait (%p7295_p6), [#allocation9], 8192   ;;  %p7296_p2 = pmov %p7293_p5 }
  0xa8   : > { %6739 = vsyncadd (%p7296_p2), [#allocation9], 4294959104  ;;  %p7297_p10 = pmov %p7296_p2 }
  0xa9   : > { %p7298_p11 = pmov %p7296_p2 }
  0xaa   : > { %6741 = dma.done.wait (%p7297_p10), [#allocation12], 28736  }
  0xab   : > { %6743 = vsyncadd (%p7298_p11), [#allocation12], 4294938560  ;;  %v5696_v0 = vld [vmem:[#allocation7 + $0xe4] ss:$16 sps:$4 sm:$0xff]   ;;  %v5700_v2 = vld [vmem:[#allocation7 + $0xe0] ss:$16 sps:$4 sm:$0xff]  }
  0xac   : > { %v5698_v1 = vld [vmem:[#allocation7 + $0x2e4] ss:$16 sps:$4 sm:$0xff]   ;;  %1917 = vmatprep.subr.bf16.mxu0 %v5696_v0  ;;  %v5701_v3 = vld [vmem:[#allocation7 + $0x2e0] ss:$16 sps:$4 sm:$0xff]   ;;  %s4956_s14 = sshll.u32 %s7037_s0, 3  ;;  %s5580_s27 = smul.u32 56, %s7037_s0 }
  0xad   : > { %1958 = vmatprep.subr.bf16.mxu1 %v5698_v1  ;;  %v5702_v4 = vld [vmem:[#allocation7 + $0xc4] ss:$16 sps:$4 sm:$0xff]   ;;  %1918 = vmatpush1.bf16.msra.mxu0 %v5700_v2  ;;  %v5706_v6 = vld [vmem:[#allocation7 + $0xc0] ss:$16 sps:$4 sm:$0xff]   ;;  %s7132_s7 = scalar_lea.vmem [#allocation15], %s4956_s14  ;;  %s5486_s4 = sshll.u32 %s6865_s23, 7 }
  0xae   : > { %1959 = vmatpush1.bf16.msra.mxu1 %v5701_v3  ;;  %v5704_v5 = vld [vmem:[#allocation7 + $0x2c4] ss:$16 sps:$4 sm:$0xff]   ;;  %1919 = vmatprep.subr.bf16.mxu0 %v5702_v4  ;;  %v5707_v7 = vld [vmem:[#allocation7 + $0x2c0] ss:$16 sps:$4 sm:$0xff]   ;;  %s7175_s21 = scalar_lea.vmem [#allocation14], %s5580_s27  ;;  %s4764_s12 = scalar_lea.hbm %s7265_s11, %s5486_s4 }
  0xaf   : > { %1960 = vmatprep.subr.bf16.mxu1 %v5704_v5  ;;  %v5708_v8 = vld [vmem:[#allocation7 + $0xa4] ss:$16 sps:$4 sm:$0xff]   ;;  %v5712_v10 = vld [vmem:[#allocation7 + $0xa0] ss:$16 sps:$4 sm:$0xff]   ;;  %p7299_p13 = scmp.ne.s32.totalorder %s7286_s29, 0  ;;  %s6782_s8 = smov [#allocation15]  }
  0xb0   : > { %v5710_v9 = vld [vmem:[#allocation7 + $0x2a4] ss:$16 sps:$4 sm:$0xff]   ;;  %v5713_v11 = vld [vmem:[#allocation7 + $0x2a0] ss:$16 sps:$4 sm:$0xff]   ;;  %s6660_s15 = sshll.u32 %s6782_s8, 4  ;;  %s6661_s15 = int_to_ptr.vmem [resolvable:$false] %s6660_s15 }
  0xb1   : > { %1920 = vmatpush1.bf16.msra.mxu0 %v5706_v6  ;;  %v5714_v12 = vld [vmem:[#allocation7 + $0x84] ss:$16 sps:$4 sm:$0xff]   ;;  %v5718_v14 = vld [vmem:[#allocation7 + $0x80] ss:$16 sps:$4 sm:$0xff]   ;;  %s6662_s22 = scalar_lea.vmem %s6661_s15, 256 }
  0xb2   : > { %1961 = vmatpush1.bf16.msra.mxu1 %v5707_v7  ;;  %1921 = vmatprep.subr.bf16.mxu0 %v5708_v8  ;;  %v5716_v13 = vld [vmem:[#allocation7 + $0x284] ss:$16 sps:$4 sm:$0xff]   ;;  %v5719_v15 = vld [vmem:[#allocation7 + $0x280] ss:$16 sps:$4 sm:$0xff]  }
  0xb3   : > { %1962 = vmatprep.subr.bf16.mxu1 %v5710_v9  ;;  %v5720_v16 = vld [vmem:[#allocation7 + $0x64] ss:$16 sps:$4 sm:$0xff]   ;;  %v5724_v18 = vld [vmem:[#allocation7 + $0x60] ss:$16 sps:$4 sm:$0xff]  }
  0xb4   : > { %v5722_v17 = vld [vmem:[#allocation7 + $0x264] ss:$16 sps:$4 sm:$0xff]   ;;  %v5725_v19 = vld [vmem:[#allocation7 + $0x260] ss:$16 sps:$4 sm:$0xff]  }
  0xb5   : > { %1922 = vmatpush1.bf16.msra.mxu0 %v5712_v10  ;;  %v5726_v20 = vld [vmem:[#allocation7 + $0x44] ss:$16 sps:$4 sm:$0xff]   ;;  %v5730_v22 = vld [vmem:[#allocation7 + $0x40] ss:$16 sps:$4 sm:$0xff]  }
  0xb6   : > { %1963 = vmatpush1.bf16.msra.mxu1 %v5713_v11  ;;  %1923 = vmatprep.subr.bf16.mxu0 %v5714_v12  ;;  %v5728_v21 = vld [vmem:[#allocation7 + $0x244] ss:$16 sps:$4 sm:$0xff]   ;;  %v5731_v23 = vld [vmem:[#allocation7 + $0x240] ss:$16 sps:$4 sm:$0xff]  }
  0xb7   : > { %1964 = vmatprep.subr.bf16.mxu1 %v5716_v13  ;;  %v5732_v24 = vld [vmem:[#allocation7 + $0x24] ss:$16 sps:$4 sm:$0xff]   ;;  %v5736_v26 = vld [vmem:[#allocation7 + $0x20] ss:$16 sps:$4 sm:$0xff]  }
  0xb8   : > { %v5734_v25 = vld [vmem:[#allocation7 + $0x224] ss:$16 sps:$4 sm:$0xff]   ;;  %v5737_v27 = vld [vmem:[#allocation7 + $0x220] ss:$16 sps:$4 sm:$0xff]  }
  0xb9   : > { %1924 = vmatpush1.bf16.msra.mxu0 %v5718_v14  ;;  %v5738_v28 = vld [vmem:[#allocation7 + $0x4] ss:$16 sps:$4 sm:$0xff]   ;;  %v5742_v30 = vld [vmem:[#allocation7] ss:$16 sps:$4 sm:$0xff]  }
  0xba   : > { %1965 = vmatpush1.bf16.msra.mxu1 %v5719_v15  ;;  %1925 = vmatprep.subr.bf16.mxu0 %v5720_v16  ;;  %v5740_v29 = vld [vmem:[#allocation7 + $0x204] ss:$16 sps:$4 sm:$0xff]   ;;  %v5743_v31 = vld [vmem:[#allocation7 + $0x200] ss:$16 sps:$4 sm:$0xff]   ;;  %v6781_v16 = vmov 0  }
  0xbb   : > { %1966 = vmatprep.subr.bf16.mxu1 %v5722_v17  ;;  %v5744_v32 = vld [vmem:[#allocation7 + $0x1e4] ss:$16 sps:$4 sm:$0xff]   ;;  %v5748_v34 = vld [vmem:[#allocation7 + $0x1e0] ss:$16 sps:$4 sm:$0xff]  }
  0xbc   : > { %v5746_v33 = vld [vmem:[#allocation7 + $0x3e4] ss:$16 sps:$4 sm:$0xff]   ;;  %v5749_v35 = vld [vmem:[#allocation7 + $0x3e0] ss:$16 sps:$4 sm:$0xff]  }
  0xbd   : > { %1926 = vmatpush1.bf16.msra.mxu0 %v5724_v18  ;;  %v5750_v36 = vld [vmem:[#allocation7 + $0x1c4] ss:$16 sps:$4 sm:$0xff]   ;;  %v5754_v38 = vld [vmem:[#allocation7 + $0x1c0] ss:$16 sps:$4 sm:$0xff]  }
  0xbe   : > { %1967 = vmatpush1.bf16.msra.mxu1 %v5725_v19  ;;  %1927 = vmatprep.subr.bf16.mxu0 %v5726_v20  ;;  %v5752_v37 = vld [vmem:[#allocation7 + $0x3c4] ss:$16 sps:$4 sm:$0xff]   ;;  %v5755_v39 = vld [vmem:[#allocation7 + $0x3c0] ss:$16 sps:$4 sm:$0xff]  }
  0xbf   : > { %1968 = vmatprep.subr.bf16.mxu1 %v5728_v21  ;;  %v5756_v40 = vld [vmem:[#allocation7 + $0x1a4] ss:$16 sps:$4 sm:$0xff]   ;;  %v5760_v42 = vld [vmem:[#allocation7 + $0x1a0] ss:$16 sps:$4 sm:$0xff]  }
  0xc0   : > { %v5758_v41 = vld [vmem:[#allocation7 + $0x3a4] ss:$16 sps:$4 sm:$0xff]   ;;  %v5761_v43 = vld [vmem:[#allocation7 + $0x3a0] ss:$16 sps:$4 sm:$0xff]  }
  0xc1   : > { %1928 = vmatpush1.bf16.msra.mxu0 %v5730_v22  ;;  %v5762_v44 = vld [vmem:[#allocation7 + $0x184] ss:$16 sps:$4 sm:$0xff]   ;;  %v5766_v49 = vld [vmem:[#allocation7 + $0x180] ss:$16 sps:$4 sm:$0xff]  }
  0xc2   : > { %1969 = vmatpush1.bf16.msra.mxu1 %v5731_v23  ;;  %1929 = vmatprep.subr.bf16.mxu0 %v5732_v24  ;;  %v5764_v45 = vld [vmem:[#allocation7 + $0x384] ss:$16 sps:$4 sm:$0xff]   ;;  %v5767_v50 = vld [vmem:[#allocation7 + $0x380] ss:$16 sps:$4 sm:$0xff]  }
  0xc3   : > { %1970 = vmatprep.subr.bf16.mxu1 %v5734_v25  ;;  %v522_v46 = vld [vmem:[%s7041_s6] sm:$0xff]  ;;  %v523_v48 = vld [vmem:[%s7041_s6 + $0x8] sm:$0xff] }
  0xc4   : > { %v7068_v47 = vcombine.high %v522_v46, %v522_v46  ;;  %v7071_v51 = vcombine.high %v523_v48, %v523_v48  ;;  %v5768_v52 = vld [vmem:[#allocation7 + $0x164] ss:$16 sps:$4 sm:$0xff]   ;;  %v5772_v54 = vld [vmem:[#allocation7 + $0x160] ss:$16 sps:$4 sm:$0xff]   ;;  %v7075_v6 = vcombine.low %v522_v46, %v522_v46  ;;  %v7077_v7 = vcombine.low %v523_v48, %v523_v48  ;;  %v5856_v48 = vld [vmem:[#allocation7 + $0xcc] ss:$16 sps:$4 sm:$0xff]  }
  0xc5   : > { %1930 = vmatpush1.bf16.msra.mxu0 %v5736_v26  ;;  %v5770_v53 = vld [vmem:[#allocation7 + $0x364] ss:$16 sps:$4 sm:$0xff]   ;;  %v5773_v55 = vld [vmem:[#allocation7 + $0x360] ss:$16 sps:$4 sm:$0xff]  }
  0xc6   : > { %1971 = vmatpush1.bf16.msra.mxu1 %v5737_v27  ;;  %1931 = vmatprep.subr.bf16.mxu0 %v5738_v28  ;;  %v5774_v56 = vld [vmem:[#allocation7 + $0x144] ss:$16 sps:$4 sm:$0xff]   ;;  %v5778_v58 = vld [vmem:[#allocation7 + $0x140] ss:$16 sps:$4 sm:$0xff]  }
  0xc7   : > { %1972 = vmatprep.subr.bf16.mxu1 %v5740_v29  ;;  %1949 = vmatprep.mubr.bf16.mxu0 %v7068_v47  ;;  %v5776_v57 = vld [vmem:[#allocation7 + $0x344] ss:$16 sps:$4 sm:$0xff]   ;;  %v5779_v59 = vld [vmem:[#allocation7 + $0x340] ss:$16 sps:$4 sm:$0xff]  }
  0xc8   : > { %1990 = vmatprep.mubr.bf16.mxu1 %v7071_v51  ;;  %v5780_v60 = vld [vmem:[#allocation7 + $0x124] ss:$16 sps:$4 sm:$0xff]   ;;  %v5784_v62 = vld [vmem:[#allocation7 + $0x120] ss:$16 sps:$4 sm:$0xff]  }
  0xc9   : > { %1932 = vmatpush1.bf16.msra.mxu0 %v5742_v30  ;;  %v5782_v61 = vld [vmem:[#allocation7 + $0x324] ss:$16 sps:$4 sm:$0xff]   ;;  %v5785_v63 = vld [vmem:[#allocation7 + $0x320] ss:$16 sps:$4 sm:$0xff]  }
  0xca   : > { %1973 = vmatpush1.bf16.msra.mxu1 %v5743_v31  ;;  %1933 = vmatprep.subr.bf16.mxu0 %v5744_v32  ;;  %v5786_v0 = vld [vmem:[#allocation7 + $0x104] ss:$16 sps:$4 sm:$0xff]   ;;  %v5790_v2 = vld [vmem:[#allocation7 + $0x100] ss:$16 sps:$4 sm:$0xff]  }
  0xcb   : > { %1974 = vmatprep.subr.bf16.mxu1 %v5746_v33  ;;  %v5788_v1 = vld [vmem:[#allocation7 + $0x304] ss:$16 sps:$4 sm:$0xff]   ;;  %v5791_v3 = vld [vmem:[#allocation7 + $0x300] ss:$16 sps:$4 sm:$0xff]  }
  0xcc   : > { %v5798_v4 = vld [vmem:[#allocation7 + $0x4e4] ss:$16 sps:$4 sm:$0xff]   ;;  %v5796_v8 = vld [vmem:[#allocation7 + $0x4e0] ss:$16 sps:$4 sm:$0xff]  }
  0xcd   : > { %1934 = vmatpush2.bf16.msra.mxu0 %v5748_v34  ;;  %v5801_v5 = vld [vmem:[#allocation7 + $0x6e4] ss:$16 sps:$4 sm:$0xff]   ;;  %v5799_v9 = vld [vmem:[#allocation7 + $0x6e0] ss:$16 sps:$4 sm:$0xff]  }
  0xce   : > { %1975 = vmatpush2.bf16.msra.mxu1 %v5749_v35  ;;  %1935 = vmatprep.subr.bf16.mxu0 %v5750_v36  ;;  %v5804_v10 = vld [vmem:[#allocation7 + $0x4c4] ss:$16 sps:$4 sm:$0xff]   ;;  %v5802_v12 = vld [vmem:[#allocation7 + $0x4c0] ss:$16 sps:$4 sm:$0xff]  }
  0xcf   : > { %1976 = vmatprep.subr.bf16.mxu1 %v5752_v37  ;;  %v5807_v11 = vld [vmem:[#allocation7 + $0x6c4] ss:$16 sps:$4 sm:$0xff]   ;;  %v5805_v13 = vld [vmem:[#allocation7 + $0x6c0] ss:$16 sps:$4 sm:$0xff]  }
  0xd0   : > { %v5810_v14 = vld [vmem:[#allocation7 + $0x4a4] ss:$16 sps:$4 sm:$0xff]   ;;  %v5808_v17 = vld [vmem:[#allocation7 + $0x4a0] ss:$16 sps:$4 sm:$0xff]  }
  0xd1   : > { %1936 = vmatpush2.bf16.msra.mxu0 %v5754_v38  ;;  %v5813_v15 = vld [vmem:[#allocation7 + $0x6a4] ss:$16 sps:$4 sm:$0xff]   ;;  %v5811_v18 = vld [vmem:[#allocation7 + $0x6a0] ss:$16 sps:$4 sm:$0xff]  }
  0xd2   : > { %1977 = vmatpush2.bf16.msra.mxu1 %v5755_v39  ;;  %1937 = vmatprep.subr.bf16.mxu0 %v5756_v40  ;;  %v5816_v19 = vld [vmem:[#allocation7 + $0x484] ss:$16 sps:$4 sm:$0xff]   ;;  %v5814_v21 = vld [vmem:[#allocation7 + $0x480] ss:$16 sps:$4 sm:$0xff]  }
  0xd3   : > { %1978 = vmatprep.subr.bf16.mxu1 %v5758_v41  ;;  %v5819_v20 = vld [vmem:[#allocation7 + $0x684] ss:$16 sps:$4 sm:$0xff]   ;;  %v5817_v22 = vld [vmem:[#allocation7 + $0x680] ss:$16 sps:$4 sm:$0xff]  }
  0xd4   : > { %v5822_v23 = vld [vmem:[#allocation7 + $0x464] ss:$16 sps:$4 sm:$0xff]   ;;  %v5820_v25 = vld [vmem:[#allocation7 + $0x460] ss:$16 sps:$4 sm:$0xff]  }
  0xd5   : > { %1938 = vmatpush2.bf16.msra.mxu0 %v5760_v42  ;;  %v5825_v24 = vld [vmem:[#allocation7 + $0x664] ss:$16 sps:$4 sm:$0xff]   ;;  %v5823_v26 = vld [vmem:[#allocation7 + $0x660] ss:$16 sps:$4 sm:$0xff]   ;;  %v5850_v42 = vld [vmem:[#allocation7 + $0xec] ss:$16 sps:$4 sm:$0xff]  }
  0xd6   : > { %1979 = vmatpush2.bf16.msra.mxu1 %v5761_v43  ;;  %1939 = vmatprep.subr.bf16.mxu0 %v5762_v44  ;;  %v5828_v27 = vld [vmem:[#allocation7 + $0x444] ss:$16 sps:$4 sm:$0xff]   ;;  %v5826_v29 = vld [vmem:[#allocation7 + $0x440] ss:$16 sps:$4 sm:$0xff]  }
  0xd7   : > { %1980 = vmatprep.subr.bf16.mxu1 %v5764_v45  ;;  %v5831_v28 = vld [vmem:[#allocation7 + $0x644] ss:$16 sps:$4 sm:$0xff]   ;;  %v5829_v30 = vld [vmem:[#allocation7 + $0x640] ss:$16 sps:$4 sm:$0xff]   ;;  %v5848_v45 = vld [vmem:[#allocation7 + $0xe8] ss:$16 sps:$4 sm:$0xff]  }
  0xd8   : > { %v5834_v31 = vld [vmem:[#allocation7 + $0x424] ss:$16 sps:$4 sm:$0xff]   ;;  %v5832_v34 = vld [vmem:[#allocation7 + $0x420] ss:$16 sps:$4 sm:$0xff]  }
  0xd9   : > { %1940 = vmatpush2.bf16.msra.mxu0 %v5766_v49  ;;  %v5837_v32 = vld [vmem:[#allocation7 + $0x624] ss:$16 sps:$4 sm:$0xff]   ;;  %v5835_v36 = vld [vmem:[#allocation7 + $0x620] ss:$16 sps:$4 sm:$0xff]  }
  0xda   : > { %1981 = vmatpush2.bf16.msra.mxu1 %v5767_v50  ;;  %1941 = vmatprep.subr.bf16.mxu0 %v5768_v52  ;;  %v7083_v33 = vld [vmem:[%s7041_s6 + $0x10] sm:$0xff]  ;;  %v5847_v44 = vld [vmem:[%s7041_s6 + $0x18] ss:$0 sps:$4 sm:$0xff]  }
  0xdb   : > { %1982 = vmatprep.subr.bf16.mxu1 %v5770_v53  ;;  %v7087_v35 = vcombine.high %v7083_v33, %v7083_v33  ;;  %v5840_v37 = vld [vmem:[#allocation7 + $0x404] ss:$16 sps:$4 sm:$0xff]   ;;  %v5838_v39 = vld [vmem:[#allocation7 + $0x400] ss:$16 sps:$4 sm:$0xff]   ;;  %v5854_v50 = vld [vmem:[#allocation7 + $0xc8] ss:$16 sps:$4 sm:$0xff]  }
  0xdc   : > { %v5843_v38 = vld [vmem:[#allocation7 + $0x604] ss:$16 sps:$4 sm:$0xff]   ;;  %v5841_v40 = vld [vmem:[#allocation7 + $0x600] ss:$16 sps:$4 sm:$0xff]   ;;  %v5862_v53 = vld [vmem:[#allocation7 + $0xac] ss:$16 sps:$4 sm:$0xff]  }
  0xdd   : > { %1942 = vmatpush2.bf16.msra.mxu0 %v5772_v54  ;;  %v5846_v41 = vld [vmem:[#allocation7 + $0x5e4] ss:$16 sps:$4 sm:$0xff]   ;;  %v5844_v43 = vld [vmem:[#allocation7 + $0x5e0] ss:$16 sps:$4 sm:$0xff]  }
  0xde   : > { %1983 = vmatpush2.bf16.msra.mxu1 %v5773_v55  ;;  %1943 = vmatprep.subr.bf16.mxu0 %v5774_v56  ;;  %v5853_v46 = vld [vmem:[#allocation7 + $0x5c4] ss:$16 sps:$4 sm:$0xff]   ;;  %v5851_v49 = vld [vmem:[#allocation7 + $0x5c0] ss:$16 sps:$4 sm:$0xff]   ;;  %v5860_v55 = vld [vmem:[#allocation7 + $0xa8] ss:$16 sps:$4 sm:$0xff]  }
  0xdf   : > { %1984 = vmatprep.subr.bf16.mxu1 %v5776_v57  ;;  %v5859_v52 = vld [vmem:[#allocation7 + $0x5a4] ss:$16 sps:$4 sm:$0xff]   ;;  %v5857_v54 = vld [vmem:[#allocation7 + $0x5a0] ss:$16 sps:$4 sm:$0xff]   ;;  %v5868_v57 = vld [vmem:[#allocation7 + $0x8c] ss:$16 sps:$4 sm:$0xff]  }
  0xe0   : > { %v5865_v56 = vld [vmem:[#allocation7 + $0x584] ss:$16 sps:$4 sm:$0xff]  }
  0xe1   : > { %1944 = vmatpush2.bf16.msra.mxu0 %v5778_v58  ;;  %v5863_v58 = vld [vmem:[#allocation7 + $0x580] ss:$16 sps:$4 sm:$0xff]  }
  0xe2   : > { %1985 = vmatpush2.bf16.msra.mxu1 %v5779_v59  ;;  %1945 = vmatprep.subr.bf16.mxu0 %v5780_v60  ;;  %v5866_v59 = vld [vmem:[#allocation7 + $0x88] ss:$16 sps:$4 sm:$0xff]   ;;  %v5871_v60 = vld [vmem:[#allocation7 + $0x564] ss:$16 sps:$4 sm:$0xff]  }
  0xe3   : > { %1986 = vmatprep.subr.bf16.mxu1 %v5782_v61  ;;  %v5874_v61 = vld [vmem:[#allocation7 + $0x6c] ss:$16 sps:$4 sm:$0xff]  }
  0xe5   : > { %1946 = vmatpush2.bf16.msra.mxu0 %v5784_v62  ;;  %v5869_v62 = vld [vmem:[#allocation7 + $0x560] ss:$16 sps:$4 sm:$0xff]  }
  0xe6   : > { %1987 = vmatpush2.bf16.msra.mxu1 %v5785_v63  ;;  %1947 = vmatprep.subr.bf16.mxu0 %v5786_v0  ;;  %v5877_v63 = vld [vmem:[#allocation7 + $0x544] ss:$16 sps:$4 sm:$0xff]   ;;  %v5880_v0 = vld [vmem:[#allocation7 + $0x4c] ss:$16 sps:$4 sm:$0xff]  }
  0xe7   : > { %1988 = vmatprep.subr.bf16.mxu1 %v5788_v1  ;;  %v5875_v1 = vld [vmem:[#allocation7 + $0x540] ss:$16 sps:$4 sm:$0xff]  }
  0xe9   : > { %1948 = vmatpush2.bf16.msra.mxu0 %v5790_v2  ;;  %v5878_v2 = vld [vmem:[#allocation7 + $0x48] ss:$16 sps:$4 sm:$0xff]  }
  0xea   : > { %1989 = vmatpush2.bf16.msra.mxu1 %v5791_v3  ;;  %1999 = vmatprep.subr.bf16.mxu0 %v5798_v4  ;;  %v5883_v3 = vld [vmem:[#allocation7 + $0x524] ss:$16 sps:$4 sm:$0xff]   ;;  %v5886_v4 = vld [vmem:[#allocation7 + $0x2c] ss:$16 sps:$4 sm:$0xff]  }
  0xeb   : > { %2040 = vmatprep.subr.bf16.mxu1 %v5801_v5  ;;  %v5881_v5 = vld [vmem:[#allocation7 + $0x520] ss:$16 sps:$4 sm:$0xff]  }
  0xec   : > { %1950 = vmatmul.mubr.bf16.vlgmr.msra.gmra.mxu0 %v7075_v6 }
  0xed   : > { %1991 = vmatmul.mubr.bf16.vlgmr.msra.gmra.mxu1 %v7077_v7  ;;  %2000 = vmatpush1.bf16.msra.mxu0 %v5796_v8  ;;  %v5884_v8 = vld [vmem:[#allocation7 + $0x28] ss:$16 sps:$4 sm:$0xff]  }
  0xee   : > { %2041 = vmatpush1.bf16.msra.mxu1 %v5799_v9  ;;  %2001 = vmatprep.subr.bf16.mxu0 %v5804_v10  ;;  %v5889_v9 = vld [vmem:[#allocation7 + $0x504] ss:$16 sps:$4 sm:$0xff]   ;;  %v5892_v10 = vld [vmem:[#allocation7 + $0xc] ss:$16 sps:$4 sm:$0xff]  }
  0xef   : > { %2042 = vmatprep.subr.bf16.mxu1 %v5807_v11  ;;  %2072 = vmatprep.mubr.bf16.mxu1 %v6781_v16  ;;  %v5887_v11 = vld [vmem:[#allocation7 + $0x500] ss:$16 sps:$4 sm:$0xff]  }
  0xf0   : > { %2031 = vmatprep.mubr.bf16.mxu0 %v7087_v35 }
  0xf1   : > { %2002 = vmatpush1.bf16.msra.mxu0 %v5802_v12  ;;  %v5890_v12 = vld [vmem:[#allocation7 + $0x8] ss:$16 sps:$4 sm:$0xff]  }
  0xf2   : > { %2043 = vmatpush1.bf16.msra.mxu1 %v5805_v13  ;;  %2003 = vmatprep.subr.bf16.mxu0 %v5810_v14  ;;  %v5897_v13 = vld [vmem:[#allocation7 + $0x1ec] ss:$16 sps:$4 sm:$0xff]  }
  0xf3   : > { %2044 = vmatprep.subr.bf16.mxu1 %v5813_v15  ;;  %v5900_v14 = vld [vmem:[#allocation7 + $0x2ec] ss:$16 sps:$4 sm:$0xff]   ;;  %v7094_v15 = vcombine.low %v7083_v33, %v7083_v33  ;;  %v5919_v33 = vld [vmem:[#allocation7 + $0x168] ss:$16 sps:$4 sm:$0xff]  }
  0xf5   : > { %2004 = vmatpush1.bf16.msra.mxu0 %v5808_v17  ;;  %v5895_v17 = vld [vmem:[#allocation7 + $0x1e8] ss:$16 sps:$4 sm:$0xff]  }
  0xf6   : > { %2045 = vmatpush1.bf16.msra.mxu1 %v5811_v18  ;;  %2005 = vmatprep.subr.bf16.mxu0 %v5816_v19  ;;  %v5898_v18 = vld [vmem:[#allocation7 + $0x2e8] ss:$16 sps:$4 sm:$0xff]   ;;  %v5903_v19 = vld [vmem:[#allocation7 + $0x1cc] ss:$16 sps:$4 sm:$0xff]  }
  0xf7   : > { %2046 = vmatprep.subr.bf16.mxu1 %v5819_v20  ;;  %v5906_v20 = vld [vmem:[#allocation7 + $0x2cc] ss:$16 sps:$4 sm:$0xff]  }
  0xf9   : > { %2006 = vmatpush1.bf16.msra.mxu0 %v5814_v21  ;;  %v5901_v21 = vld [vmem:[#allocation7 + $0x1c8] ss:$16 sps:$4 sm:$0xff]  }
  0xfa   : > { %2047 = vmatpush1.bf16.msra.mxu1 %v5817_v22  ;;  %2007 = vmatprep.subr.bf16.mxu0 %v5822_v23  ;;  %v5904_v22 = vld [vmem:[#allocation7 + $0x2c8] ss:$16 sps:$4 sm:$0xff]   ;;  %v5909_v23 = vld [vmem:[#allocation7 + $0x1ac] ss:$16 sps:$4 sm:$0xff]  }
  0xfb   : > { %2048 = vmatprep.subr.bf16.mxu1 %v5825_v24  ;;  %v5912_v24 = vld [vmem:[#allocation7 + $0x2ac] ss:$16 sps:$4 sm:$0xff]  }
  0xfd   : > { %2008 = vmatpush1.bf16.msra.mxu0 %v5820_v25  ;;  %v5907_v25 = vld [vmem:[#allocation7 + $0x1a8] ss:$16 sps:$4 sm:$0xff]  }
  0xfe   : > { %2049 = vmatpush1.bf16.msra.mxu1 %v5823_v26  ;;  %2009 = vmatprep.subr.bf16.mxu0 %v5828_v27  ;;  %v5910_v26 = vld [vmem:[#allocation7 + $0x2a8] ss:$16 sps:$4 sm:$0xff]   ;;  %v5915_v27 = vld [vmem:[#allocation7 + $0x18c] ss:$16 sps:$4 sm:$0xff]  }
  0xff   : > { %2050 = vmatprep.subr.bf16.mxu1 %v5831_v28  ;;  %v5918_v28 = vld [vmem:[#allocation7 + $0x28c] ss:$16 sps:$4 sm:$0xff]  }
 0x101   : > { %2010 = vmatpush1.bf16.msra.mxu0 %v5826_v29  ;;  %v5913_v29 = vld [vmem:[#allocation7 + $0x188] ss:$16 sps:$4 sm:$0xff]  }
 0x102   : > { %2051 = vmatpush1.bf16.msra.mxu1 %v5829_v30  ;;  %2011 = vmatprep.subr.bf16.mxu0 %v5834_v31  ;;  %v5916_v30 = vld [vmem:[#allocation7 + $0x288] ss:$16 sps:$4 sm:$0xff]   ;;  %v5921_v31 = vld [vmem:[#allocation7 + $0x16c] ss:$16 sps:$4 sm:$0xff]  }
 0x103   : > { %2052 = vmatprep.subr.bf16.mxu1 %v5837_v32  ;;  %v5924_v32 = vld [vmem:[#allocation7 + $0x26c] ss:$16 sps:$4 sm:$0xff]  }
 0x105   : > { %2012 = vmatpush1.bf16.msra.mxu0 %v5832_v34  ;;  %v5927_v34 = vld [vmem:[#allocation7 + $0x14c] ss:$16 sps:$4 sm:$0xff]  }
 0x106   : > { %2053 = vmatpush1.bf16.msra.mxu1 %v5835_v36  ;;  %2013 = vmatprep.subr.bf16.mxu0 %v5840_v37  ;;  %v5930_v36 = vld [vmem:[#allocation7 + $0x24c] ss:$16 sps:$4 sm:$0xff]   ;;  %v5925_v37 = vld [vmem:[#allocation7 + $0x148] ss:$16 sps:$4 sm:$0xff]  }
 0x107   : > { %2054 = vmatprep.subr.bf16.mxu1 %v5843_v38  ;;  %v5928_v38 = vld [vmem:[#allocation7 + $0x248] ss:$16 sps:$4 sm:$0xff]  }
 0x109   : > { %2014 = vmatpush1.bf16.msra.mxu0 %v5838_v39  ;;  %v5933_v39 = vld [vmem:[#allocation7 + $0x12c] ss:$16 sps:$4 sm:$0xff]  }
 0x10a   : > { %2055 = vmatpush1.bf16.msra.mxu1 %v5841_v40  ;;  %2015 = vmatprep.subr.bf16.mxu0 %v5846_v41  ;;  %v5936_v40 = vld [vmem:[#allocation7 + $0x22c] ss:$16 sps:$4 sm:$0xff]   ;;  %v5931_v41 = vld [vmem:[#allocation7 + $0x128] ss:$16 sps:$4 sm:$0xff]  }
 0x10b   : > { %2081 = vmatprep.subr.bf16.mxu1 %v5850_v42  ;;  %v5934_v42 = vld [vmem:[#allocation7 + $0x228] ss:$16 sps:$4 sm:$0xff]  }
 0x10d   : > { %2073 = vmatmul.mubr.bf16.vlgmr.msra.gmra.mxu1 %v5847_v44  ;;  %2016 = vmatpush2.bf16.msra.mxu0 %v5844_v43  ;;  %v5939_v43 = vld [vmem:[#allocation7 + $0x10c] ss:$16 sps:$4 sm:$0xff]  }
 0x10e   : > { %2082 = vmatpush1.bf16.msra.mxu1 %v5848_v45  ;;  %2017 = vmatprep.subr.bf16.mxu0 %v5853_v46  ;;  %v5942_v44 = vld [vmem:[#allocation7 + $0x20c] ss:$16 sps:$4 sm:$0xff]   ;;  %v5937_v45 = vld [vmem:[#allocation7 + $0x108] ss:$16 sps:$4 sm:$0xff]  }
 0x10f   : > { %2083 = vmatprep.subr.bf16.mxu1 %v5856_v48  ;;  %2113 = vmatprep.mubr.bf16.mxu1 %v7068_v47  ;;  %v5872_v47 = vld [vmem:[#allocation7 + $0x68] ss:$16 sps:$4 sm:$0xff]   ;;  %v5945_v48 = vld [vmem:[#allocation7 + $0x3ec] ss:$16 sps:$4 sm:$0xff]  }
 0x110   : > { %v5940_v46 = vld [vmem:[#allocation7 + $0x208] ss:$16 sps:$4 sm:$0xff]  }
 0x111   : > { %2018 = vmatpush2.bf16.msra.mxu0 %v5851_v49  ;;  %v5948_v49 = vld [vmem:[#allocation7 + $0x4ec] ss:$16 sps:$4 sm:$0xff]  }
 0x112   : > { %2084 = vmatpush1.bf16.msra.mxu1 %v5854_v50  ;;  %2019 = vmatprep.subr.bf16.mxu0 %v5859_v52  ;;  %v5943_v50 = vld [vmem:[#allocation7 + $0x3e8] ss:$16 sps:$4 sm:$0xff]  }
 0x113   : > { %2085 = vmatprep.subr.bf16.mxu1 %v5862_v53  ;;  %v5946_v52 = vld [vmem:[#allocation7 + $0x4e8] ss:$16 sps:$4 sm:$0xff]   ;;  %v5951_v53 = vld [vmem:[#allocation7 + $0x3cc] ss:$16 sps:$4 sm:$0xff]  }
 0x115   : > { %2020 = vmatpush2.bf16.msra.mxu0 %v5857_v54  ;;  %v5954_v54 = vld [vmem:[#allocation7 + $0x4cc] ss:$16 sps:$4 sm:$0xff]  }
 0x116   : > { %2086 = vmatpush1.bf16.msra.mxu1 %v5860_v55  ;;  %2021 = vmatprep.subr.bf16.mxu0 %v5865_v56  ;;  %v5949_v55 = vld [vmem:[#allocation7 + $0x3c8] ss:$16 sps:$4 sm:$0xff]  }
 0x117   : > { %2087 = vmatprep.subr.bf16.mxu1 %v5868_v57  ;;  %v5952_v56 = vld [vmem:[#allocation7 + $0x4c8] ss:$16 sps:$4 sm:$0xff]   ;;  %v5957_v57 = vld [vmem:[#allocation7 + $0x3ac] ss:$16 sps:$4 sm:$0xff]  }
 0x119   : > { %2022 = vmatpush2.bf16.msra.mxu0 %v5863_v58  ;;  %v5960_v58 = vld [vmem:[#allocation7 + $0x4ac] ss:$16 sps:$4 sm:$0xff]  }
 0x11a   : > { %2088 = vmatpush1.bf16.msra.mxu1 %v5866_v59  ;;  %2023 = vmatprep.subr.bf16.mxu0 %v5871_v60  ;;  %v5955_v59 = vld [vmem:[#allocation7 + $0x3a8] ss:$16 sps:$4 sm:$0xff]  }
 0x11b   : > { %2089 = vmatprep.subr.bf16.mxu1 %v5874_v61  ;;  %v5958_v60 = vld [vmem:[#allocation7 + $0x4a8] ss:$16 sps:$4 sm:$0xff]   ;;  %v5963_v61 = vld [vmem:[#allocation7 + $0x38c] ss:$16 sps:$4 sm:$0xff]  }
 0x11d   : > { %2024 = vmatpush2.bf16.msra.mxu0 %v5869_v62  ;;  %v5966_v62 = vld [vmem:[#allocation7 + $0x48c] ss:$16 sps:$4 sm:$0xff]  }
 0x11e   : > { %2090 = vmatpush1.bf16.msra.mxu1 %v5872_v47  ;;  %2025 = vmatprep.subr.bf16.mxu0 %v5877_v63  ;;  %v5961_v47 = vld [vmem:[#allocation7 + $0x388] ss:$16 sps:$4 sm:$0xff]  }
 0x11f   : > { %2091 = vmatprep.subr.bf16.mxu1 %v5880_v0  ;;  %v5964_v63 = vld [vmem:[#allocation7 + $0x488] ss:$16 sps:$4 sm:$0xff]   ;;  %v5969_v0 = vld [vmem:[#allocation7 + $0x36c] ss:$16 sps:$4 sm:$0xff]  }
 0x121   : > { %2026 = vmatpush2.bf16.msra.mxu0 %v5875_v1  ;;  %v5967_v1 = vld [vmem:[#allocation7 + $0x368] ss:$16 sps:$4 sm:$0xff]  }
 0x122   : > { %2092 = vmatpush1.bf16.msra.mxu1 %v5878_v2  ;;  %2027 = vmatprep.subr.bf16.mxu0 %v5883_v3  ;;  %v5970_v2 = vld [vmem:[#allocation7 + $0x468] ss:$16 sps:$4 sm:$0xff]   ;;  %v5975_v3 = vld [vmem:[#allocation7 + $0x34c] ss:$16 sps:$4 sm:$0xff]  }
 0x123   : > { %2093 = vmatprep.subr.bf16.mxu1 %v5886_v4  ;;  %v5978_v4 = vld [vmem:[#allocation7 + $0x44c] ss:$16 sps:$4 sm:$0xff]  }
 0x125   : > { %2028 = vmatpush2.bf16.msra.mxu0 %v5881_v5  ;;  %v5976_v5 = vld [vmem:[#allocation7 + $0x448] ss:$16 sps:$4 sm:$0xff]  }
 0x126   : > { %2094 = vmatpush1.bf16.msra.mxu1 %v5884_v8  ;;  %2029 = vmatprep.subr.bf16.mxu0 %v5889_v9  ;;  %v5981_v8 = vld [vmem:[#allocation7 + $0x32c] ss:$16 sps:$4 sm:$0xff]  }
 0x127   : > { %2095 = vmatprep.subr.bf16.mxu1 %v5892_v10  ;;  %v5984_v9 = vld [vmem:[#allocation7 + $0x42c] ss:$16 sps:$4 sm:$0xff]   ;;  %v5979_v10 = vld [vmem:[#allocation7 + $0x328] ss:$16 sps:$4 sm:$0xff]  }
 0x129   : > { %2030 = vmatpush2.bf16.msra.mxu0 %v5887_v11  ;;  %v5982_v11 = vld [vmem:[#allocation7 + $0x428] ss:$16 sps:$4 sm:$0xff]  }
 0x12a   : > { %2096 = vmatpush1.bf16.msra.mxu1 %v5890_v12  ;;  %2122 = vmatprep.subr.bf16.mxu0 %v5900_v14  ;;  %v5987_v12 = vld [vmem:[#allocation7 + $0x30c] ss:$16 sps:$4 sm:$0xff]   ;;  %v5985_v14 = vld [vmem:[#allocation7 + $0x308] ss:$16 sps:$4 sm:$0xff]  }
 0x12b   : > { %2097 = vmatprep.subr.bf16.mxu1 %v5897_v13  ;;  %v5990_v13 = vld [vmem:[#allocation7 + $0x40c] ss:$16 sps:$4 sm:$0xff]  }
 0x12c   : > { %2032 = vmatmul.mubr.bf16.vlgmr.msra.gmra.mxu0 %v7094_v15 }
 0x12d   : > { %2123 = vmatpush1.bf16.msra.mxu0 %v5898_v18  ;;  %2154 = vmatprep.mubr.bf16.mxu0 %v7071_v51  ;;  %v5922_v51 = vld [vmem:[#allocation7 + $0x268] ss:$16 sps:$4 sm:$0xff]   ;;  %v5993_v18 = vld [vmem:[#allocation7 + $0x5ec] ss:$16 sps:$4 sm:$0xff]  }
 0x12e   : > { %2098 = vmatpush2.bf16.msra.mxu1 %v5895_v17  ;;  %2124 = vmatprep.subr.bf16.mxu0 %v5906_v20  ;;  %v5988_v17 = vld [vmem:[#allocation7 + $0x408] ss:$16 sps:$4 sm:$0xff]  }
 0x12f   : > { %2099 = vmatprep.subr.bf16.mxu1 %v5903_v19  ;;  %v5996_v19 = vld [vmem:[#allocation7 + $0x6ec] ss:$16 sps:$4 sm:$0xff]   ;;  %v5991_v20 = vld [vmem:[#allocation7 + $0x5e8] ss:$16 sps:$4 sm:$0xff]  }
 0x131   : > { %2125 = vmatpush1.bf16.msra.mxu0 %v5904_v22  ;;  %v5999_v22 = vld [vmem:[#allocation7 + $0x5cc] ss:$16 sps:$4 sm:$0xff]  }
 0x132   : > { %2100 = vmatpush2.bf16.msra.mxu1 %v5901_v21  ;;  %2126 = vmatprep.subr.bf16.mxu0 %v5912_v24  ;;  %v5994_v21 = vld [vmem:[#allocation7 + $0x6e8] ss:$16 sps:$4 sm:$0xff]  }
 0x133   : > { %2101 = vmatprep.subr.bf16.mxu1 %v5909_v23  ;;  %v6002_v23 = vld [vmem:[#allocation7 + $0x6cc] ss:$16 sps:$4 sm:$0xff]   ;;  %v5997_v24 = vld [vmem:[#allocation7 + $0x5c8] ss:$16 sps:$4 sm:$0xff]  }
 0x135   : > { %2127 = vmatpush1.bf16.msra.mxu0 %v5910_v26  ;;  %v6005_v26 = vld [vmem:[#allocation7 + $0x5ac] ss:$16 sps:$4 sm:$0xff]  }
 0x136   : > { %2102 = vmatpush2.bf16.msra.mxu1 %v5907_v25  ;;  %2128 = vmatprep.subr.bf16.mxu0 %v5918_v28  ;;  %v6000_v25 = vld [vmem:[#allocation7 + $0x6c8] ss:$16 sps:$4 sm:$0xff]  }
 0x137   : > { %2103 = vmatprep.subr.bf16.mxu1 %v5915_v27  ;;  %v6008_v27 = vld [vmem:[#allocation7 + $0x6ac] ss:$16 sps:$4 sm:$0xff]   ;;  %v6003_v28 = vld [vmem:[#allocation7 + $0x5a8] ss:$16 sps:$4 sm:$0xff]  }
 0x139   : > { %2129 = vmatpush1.bf16.msra.mxu0 %v5916_v30  ;;  %v6011_v30 = vld [vmem:[#allocation7 + $0x58c] ss:$16 sps:$4 sm:$0xff]  }
 0x13a   : > { %2104 = vmatpush2.bf16.msra.mxu1 %v5913_v29  ;;  %2130 = vmatprep.subr.bf16.mxu0 %v5924_v32  ;;  %v6006_v29 = vld [vmem:[#allocation7 + $0x6a8] ss:$16 sps:$4 sm:$0xff]  }
 0x13b   : > { %2105 = vmatprep.subr.bf16.mxu1 %v5921_v31  ;;  %v6014_v31 = vld [vmem:[#allocation7 + $0x68c] ss:$16 sps:$4 sm:$0xff]   ;;  %v6009_v32 = vld [vmem:[#allocation7 + $0x588] ss:$16 sps:$4 sm:$0xff]  }
 0x13d   : > { %2131 = vmatpush1.bf16.msra.mxu0 %v5922_v51  ;;  %v6017_v51 = vld [vmem:[#allocation7 + $0x56c] ss:$16 sps:$4 sm:$0xff]  }
 0x13e   : > { %2106 = vmatpush2.bf16.msra.mxu1 %v5919_v33  ;;  %2132 = vmatprep.subr.bf16.mxu0 %v5930_v36  ;;  %v6012_v33 = vld [vmem:[#allocation7 + $0x688] ss:$16 sps:$4 sm:$0xff]  }
 0x13f   : > { %2107 = vmatprep.subr.bf16.mxu1 %v5927_v34  ;;  %v6015_v34 = vld [vmem:[#allocation7 + $0x568] ss:$16 sps:$4 sm:$0xff]  }
 0x140   : > { %v6018_v36 = vld [vmem:[#allocation7 + $0x668] ss:$16 sps:$4 sm:$0xff]  }
 0x141   : > { %2133 = vmatpush1.bf16.msra.mxu0 %v5928_v38  ;;  %v6026_v38 = vld [vmem:[#allocation7 + $0x64c] ss:$16 sps:$4 sm:$0xff]  }
 0x142   : > { %2108 = vmatpush2.bf16.msra.mxu1 %v5925_v37  ;;  %2134 = vmatprep.subr.bf16.mxu0 %v5936_v40  ;;  %v6023_v37 = vld [vmem:[#allocation7 + $0x54c] ss:$16 sps:$4 sm:$0xff]   ;;  %v6024_v40 = vld [vmem:[#allocation7 + $0x648] ss:$16 sps:$4 sm:$0xff]  }
 0x143   : > { %2109 = vmatprep.subr.bf16.mxu1 %v5933_v39  ;;  %v6021_v39 = vld [vmem:[#allocation7 + $0x548] ss:$16 sps:$4 sm:$0xff]  }
 0x145   : > { %2135 = vmatpush1.bf16.msra.mxu0 %v5934_v42  ;;  %v6032_v42 = vld [vmem:[#allocation7 + $0x62c] ss:$16 sps:$4 sm:$0xff]  }
 0x146   : > { %2110 = vmatpush2.bf16.msra.mxu1 %v5931_v41  ;;  %2136 = vmatprep.subr.bf16.mxu0 %v5942_v44  ;;  %v6029_v41 = vld [vmem:[#allocation7 + $0x52c] ss:$16 sps:$4 sm:$0xff]   ;;  %v6030_v44 = vld [vmem:[#allocation7 + $0x628] ss:$16 sps:$4 sm:$0xff]  }
 0x147   : > { %2111 = vmatprep.subr.bf16.mxu1 %v5939_v43  ;;  %v6027_v43 = vld [vmem:[#allocation7 + $0x528] ss:$16 sps:$4 sm:$0xff]  }
 0x149   : > { %2137 = vmatpush1.bf16.msra.mxu0 %v5940_v46  ;;  %v6038_v46 = vld [vmem:[#allocation7 + $0x60c] ss:$16 sps:$4 sm:$0xff]  }
 0x14a   : > { %2112 = vmatpush2.bf16.msra.mxu1 %v5937_v45  ;;  %2138 = vmatprep.subr.bf16.mxu0 %v5945_v48  ;;  %v6035_v45 = vld [vmem:[#allocation7 + $0x50c] ss:$16 sps:$4 sm:$0xff]   ;;  %v6033_v48 = vld [vmem:[#allocation7 + $0x508] ss:$16 sps:$4 sm:$0xff]  }
 0x14b   : > { %2163 = vmatprep.subr.bf16.mxu1 %v5948_v49  ;;  %v6036_v49 = vld [vmem:[#allocation7 + $0x608] ss:$16 sps:$4 sm:$0xff]  }
 0x14d   : > { %2114 = vmatmul.mubr.bf16.vlgmr.msra.gmra.mxu1 %v7075_v6  ;;  %2139 = vmatpush2.bf16.msra.mxu0 %v5943_v50  ;;  %v5972_v6 = vld [vmem:[#allocation7 + $0x46c] ss:$16 sps:$4 sm:$0xff]  }
 0x14e   : > { %2164 = vmatpush1.bf16.msra.mxu1 %v5946_v52  ;;  %2140 = vmatprep.subr.bf16.mxu0 %v5951_v53  ;;  %v6039_v50 = vld [vmem:[#allocation8 + $0x78] sm:$0xff]   ;;  %v6041_v53 = vld [vmem:[#allocation8 + $0x70] sm:$0xff]  }
 0x14f   : > { %2165 = vmatprep.subr.bf16.mxu1 %v5954_v54  ;;  %2195 = vmatprep.mubr.bf16.mxu1 %v7087_v35  ;;  %v5973_v35 = vld [vmem:[#allocation7 + $0x348] ss:$16 sps:$4 sm:$0xff]   ;;  %v6042_v54 = vld [vmem:[#allocation8 + $0x30] sm:$0xff]  }
 0x150   : > { %v6040_v52 = vld [vmem:[#allocation8 + $0x38] sm:$0xff]  }
 0x151   : > { %2141 = vmatpush2.bf16.msra.mxu0 %v5949_v55  ;;  %v6469_v55 = vld [vmem:[%s7041_s6 + $0x18] ss:$0 sps:$4 sm:$0xff]   ;;  %s4766_s6 = sshll.u32 %s7132_s7, 4  ;;  %s4767_s6 = int_to_ptr.vmem [resolvable:$true] %s4766_s6 }
 0x152   : > { %2166 = vmatpush1.bf16.msra.mxu1 %v5952_v56  ;;  %2142 = vmatprep.subr.bf16.mxu0 %v5957_v57  ;;  %v6043_v56 = vld [vmem:[#allocation8 + $0x68] sm:$0xff]   ;;  %s6656_s28 = scalar_lea.vmem %s4767_s6, 128  ;;  %p6663_p1 = scmp.lt.s32.totalorder %s4767_s6, %s6661_s15 }
 0x153   : > { %2167 = vmatprep.subr.bf16.mxu1 %v5960_v58  ;;  %v6044_v57 = vld [vmem:[#allocation8 + $0x28] sm:$0xff]   ;;  %v6045_v58 = vld [vmem:[#allocation8 + $0x60] sm:$0xff]   ;;  %p6657_p0 = scmp.ne.s32.totalorder %s4767_s6, %s6656_s28  ;;  %p6664_p3 = scmp.lt.s32.totalorder %s6662_s22, %s6656_s28 }
 0x155   : > { %2143 = vmatpush2.bf16.msra.mxu0 %v5955_v59  ;;  %v6046_v59 = vld [vmem:[#allocation8 + $0x20] sm:$0xff]   ;;  %p6658_p7 = pnand %p6657_p0, %p7299_p13  ;;  %p6665_p4 = por %p6664_p3, %p6663_p1 }
 0x156   : > { %2168 = vmatpush1.bf16.msra.mxu1 %v5958_v60  ;;  %2144 = vmatprep.subr.bf16.mxu0 %v5963_v61  ;;  %v6047_v60 = vld [vmem:[#allocation8 + $0x58] sm:$0xff]  }
 0x157   : > { %2169 = vmatprep.subr.bf16.mxu1 %v5966_v62  ;;  %v6048_v61 = vld [vmem:[#allocation8 + $0x18] sm:$0xff]   ;;  %v6049_v62 = vld [vmem:[#allocation8 + $0x50] sm:$0xff]   ;;  %p6659_p9 = pneg %p6658_p7 }
 0x159   : > { %2145 = vmatpush2.bf16.msra.mxu0 %v5961_v47  ;;  %v6050_v47 = vld [vmem:[#allocation8 + $0x10] sm:$0xff]   ;;  %p6666_p8 = pnand %p6665_p4, %p6659_p9 }
 0x15a   : > { %2170 = vmatpush1.bf16.msra.mxu1 %v5964_v63  ;;  %2146 = vmatprep.subr.bf16.mxu0 %v5969_v0  ;;  %v6051_v63 = vld [vmem:[#allocation8 + $0x48] sm:$0xff]   ;;  %v6053_v0 = vld [vmem:[#allocation8 + $0x40] sm:$0xff]  }
 0x15b   : > { %2171 = vmatprep.subr.bf16.mxu1 %v5972_v6  ;;  %v6054_v6 = vld [vmem:[#allocation8] sm:$0xff]  }
 0x15d   : > { %2147 = vmatpush2.bf16.msra.mxu0 %v5967_v1 }
 0x15e   : > { %2172 = vmatpush1.bf16.msra.mxu1 %v5970_v2  ;;  %2148 = vmatprep.subr.bf16.mxu0 %v5975_v3 }
 0x15f   : > { %2173 = vmatprep.subr.bf16.mxu1 %v5978_v4 }
 0x161   : > { %2149 = vmatpush2.bf16.msra.mxu0 %v5973_v35 }
 0x162   : > { %2174 = vmatpush1.bf16.msra.mxu1 %v5976_v5  ;;  %2150 = vmatprep.subr.bf16.mxu0 %v5981_v8 }
 0x163   : > { %2175 = vmatprep.subr.bf16.mxu1 %v5984_v9 }
 0x165   : > { %2151 = vmatpush2.bf16.msra.mxu0 %v5979_v10  ;;  %v6055_v10 = vld [vmem:[#allocation8 + $0xf8] sm:$0xff]  }
 0x166   : > { %2176 = vmatpush1.bf16.msra.mxu1 %v5982_v11  ;;  %2152 = vmatprep.subr.bf16.mxu0 %v5987_v12  ;;  %v6056_v11 = vld [vmem:[#allocation8 + $0xb8] sm:$0xff]   ;;  %v6057_v12 = vld [vmem:[#allocation8 + $0xf0] sm:$0xff]  }
 0x167   : > { %2177 = vmatprep.subr.bf16.mxu1 %v5990_v13  ;;  %v6058_v13 = vld [vmem:[#allocation8 + $0xb0] sm:$0xff]  }
 0x169   : > { %2153 = vmatpush2.bf16.msra.mxu0 %v5985_v14  ;;  %v6059_v14 = vld [vmem:[#allocation8 + $0xe8] sm:$0xff]  }
 0x16a   : > { %2178 = vmatpush1.bf16.msra.mxu1 %v5988_v17  ;;  %2204 = vmatprep.subr.bf16.mxu0 %v5996_v19  ;;  %v6060_v17 = vld [vmem:[#allocation8 + $0xa8] sm:$0xff]   ;;  %v6062_v19 = vld [vmem:[#allocation8 + $0xa0] sm:$0xff]  }
 0x16b   : > { %2179 = vmatprep.subr.bf16.mxu1 %v5993_v18  ;;  %v6061_v18 = vld [vmem:[#allocation8 + $0xe0] sm:$0xff]  }
 0x16c   : > { %2155 = vmatmul.mubr.bf16.vlgmr.msra.gmra.mxu0 %v7077_v7  ;;  %v6020_v7 = vld [vmem:[#allocation7 + $0x66c] ss:$16 sps:$4 sm:$0xff]  }
 0x16d   : > { %2205 = vmatpush1.bf16.msra.mxu0 %v5994_v21  ;;  %2236 = vmatprep.mubr.bf16.mxu0 %v6781_v16  ;;  %v6064_v21 = vld [vmem:[#allocation8 + $0x98] sm:$0xff]  }
 0x16e   : > { %2180 = vmatpush2.bf16.msra.mxu1 %v5991_v20  ;;  %2206 = vmatprep.subr.bf16.mxu0 %v6002_v23  ;;  %v6063_v20 = vld [vmem:[#allocation8 + $0xd8] sm:$0xff]   ;;  %v6066_v23 = vld [vmem:[#allocation8 + $0x90] sm:$0xff]  }
 0x16f   : > { %2181 = vmatprep.subr.bf16.mxu1 %v5999_v22  ;;  %v6065_v22 = vld [vmem:[#allocation8 + $0xd0] sm:$0xff]  }
 0x171   : > { %2207 = vmatpush1.bf16.msra.mxu0 %v6000_v25 }
 0x172   : > { %2182 = vmatpush2.bf16.msra.mxu1 %v5997_v24  ;;  %2208 = vmatprep.subr.bf16.mxu0 %v6008_v27  ;;  %v6068_v27 = vld [vmem:[#allocation8 + $0x88] sm:$0xff]  }
 0x173   : > { %2183 = vmatprep.subr.bf16.mxu1 %v6005_v26  ;;  %v6067_v26 = vld [vmem:[#allocation8 + $0xc8] sm:$0xff]  }
 0x175   : > { %2209 = vmatpush1.bf16.msra.mxu0 %v6006_v29 }
 0x176   : > { %2184 = vmatpush2.bf16.msra.mxu1 %v6003_v28  ;;  %2210 = vmatprep.subr.bf16.mxu0 %v6014_v31  ;;  %v6070_v31 = vld [vmem:[#allocation8 + $0x80] sm:$0xff]  }
 0x177   : > { %2185 = vmatprep.subr.bf16.mxu1 %v6011_v30  ;;  %v6069_v30 = vld [vmem:[#allocation8 + $0xc0] sm:$0xff]  }
 0x179   : > { %2211 = vmatpush1.bf16.msra.mxu0 %v6012_v33 }
 0x17a   : > { %2186 = vmatpush2.bf16.msra.mxu1 %v6009_v32  ;;  %2212 = vmatprep.subr.bf16.mxu0 %v6020_v7  ;;  %v752_v32 = vlaneseq  ;;  %v750_v7 = vld [vmem:[%s7257_s3] sm:$0xf] }
 0x17b   : > { %2187 = vmatprep.subr.bf16.mxu1 %v6017_v51 }
 0x17c   : > { %v7105_v33 = vshrl.u32 %v752_v32, 7 }
 0x17d   : > { %2213 = vmatpush1.bf16.msra.mxu0 %v6018_v36 }
 0x17e   : > { %2188 = vmatpush2.bf16.msra.mxu1 %v6015_v34  ;;  %2214 = vmatprep.subr.bf16.mxu0 %v6026_v38  ;;  %v7108_v51 = vsub.s32 0, %v7105_v33  ;;  %v7114_v34 = vsub.s32 1, %v7105_v33 }
 0x17f   : > { %2189 = vmatprep.subr.bf16.mxu1 %v6023_v37 }
 0x180   : > { %v755_v36 = vrot.slane %v750_v7, %v7108_v51  ;;  %v759_v37 = vrot.slane %v750_v7, %v7114_v34 }
 0x181   : > { %2215 = vmatpush1.bf16.msra.mxu0 %v6024_v40 }
 0x182   : > { %2190 = vmatpush2.bf16.msra.mxu1 %v6021_v39  ;;  %2216 = vmatprep.subr.bf16.mxu0 %v6032_v42 }
 0x183   : > { %2191 = vmatprep.subr.bf16.mxu1 %v6029_v41 }
 0x185   : > { %2217 = vmatpush1.bf16.msra.mxu0 %v6030_v44 }
 0x186   : > { %2192 = vmatpush2.bf16.msra.mxu1 %v6027_v43  ;;  %2218 = vmatprep.subr.bf16.mxu0 %v6038_v46 }
 0x187   : > { %2193 = vmatprep.subr.bf16.mxu1 %v6035_v45 }
 0x189   : > { %2219 = vmatpush1.bf16.msra.mxu0 %v6036_v49 }
 0x18a   : > { %2194 = vmatpush2.bf16.msra.mxu1 %v6033_v48  ;;  %5489 = vmatprep.subr.bf16.mxu0 %v6039_v50 }
 0x18b   : > { %5511 = vmatprep.subr.bf16.mxu1 %v6055_v10 }
 0x18c   : > { %2237 = vmatmul.mubr.bf16.vlgmr.msra.gmra.mxu0 %v6469_v55 }
 0x18d   : > { %2196 = vmatmul.mubr.bf16.vlgmr.msra.gmra.mxu1 %v7094_v15  ;;  %5490 = vmatpush3.bf16.msra.mxu0 %v6040_v52  ;;  %v6052_v15 = vld [vmem:[#allocation8 + $0x8] sm:$0xff]  }
 0x18e   : > { %5491 = vmatprep.subr.bf16.mxu0 %v6041_v53  ;;  %5512 = vmatpush3.bf16.msra.mxu1 %v6056_v11 }
 0x18f   : > { %5513 = vmatprep.subr.bf16.mxu1 %v6057_v12 }
 0x191   : > { %5492 = vmatpush3.bf16.msra.mxu0 %v6042_v54 }
 0x192   : > { %5493 = vmatprep.subr.bf16.mxu0 %v6043_v56  ;;  %5514 = vmatpush3.bf16.msra.mxu1 %v6058_v13 }
 0x193   : > { %5515 = vmatprep.subr.bf16.mxu1 %v6059_v14 }
 0x195   : > { %5494 = vmatpush3.bf16.msra.mxu0 %v6044_v57 }
 0x196   : > { %5495 = vmatprep.subr.bf16.mxu0 %v6045_v58  ;;  %5516 = vmatpush3.bf16.msra.mxu1 %v6060_v17 }
 0x197   : > { %5517 = vmatprep.subr.bf16.mxu1 %v6061_v18 }
 0x199   : > { %5496 = vmatpush3.bf16.msra.mxu0 %v6046_v59 }
 0x19a   : > { %5497 = vmatprep.subr.bf16.mxu0 %v6047_v60  ;;  %5518 = vmatpush3.bf16.msra.mxu1 %v6062_v19 }
 0x19b   : > { %5519 = vmatprep.subr.bf16.mxu1 %v6063_v20 }
 0x19d   : > { %5498 = vmatpush3.bf16.msra.mxu0 %v6048_v61 }
 0x19e   : > { %5499 = vmatprep.subr.bf16.mxu0 %v6049_v62  ;;  %5520 = vmatpush3.bf16.msra.mxu1 %v6064_v21 }
 0x19f   : > { %5521 = vmatprep.subr.bf16.mxu1 %v6065_v22 }
 0x1a1   : > { %5500 = vmatpush3.bf16.msra.mxu0 %v6050_v47 }
 0x1a2   : > { %5501 = vmatprep.subr.bf16.mxu0 %v6051_v63  ;;  %5522 = vmatpush3.bf16.msra.mxu1 %v6066_v23  ;;  %v6071_v63 = vld [vmem:[#allocation10 + $0xe0] ss:$16 sps:$4 sm:$0xff]  }
 0x1a3   : > { %5523 = vmatprep.subr.bf16.mxu1 %v6067_v26  ;;  %v6074_v26 = vld [vmem:[#allocation10 + $0xe8] ss:$16 sps:$4 sm:$0xff]  }
 0x1a5   : > { %5502 = vmatpush3.bf16.msra.mxu0 %v6052_v15  ;;  %v6073_v15 = vld [vmem:[#allocation10 + $0xe4] ss:$16 sps:$4 sm:$0xff]  }
 0x1a6   : > { %5503 = vmatprep.subr.bf16.mxu0 %v6053_v0  ;;  %5524 = vmatpush3.bf16.msra.mxu1 %v6068_v27  ;;  %v6076_v0 = vld [vmem:[#allocation10 + $0xec] ss:$16 sps:$4 sm:$0xff]  }
 0x1a7   : > { %5525 = vmatprep.subr.bf16.mxu1 %v6069_v30  ;;  %v6077_v30 = vld [vmem:[#allocation10 + $0xc0] ss:$16 sps:$4 sm:$0xff]  }
 0x1a9   : > { %5504 = vmatpush3.bf16.msra.mxu0 %v6054_v6  ;;  %v7120_v6 = vsub.s32 2, %v7105_v33 }
 0x1aa   : > { %5526 = vmatpush3.bf16.msra.mxu1 %v6070_v31  ;;  %2823 = vmatprep.subr.bf16.mxu0 %v6073_v15  ;;  %v6080_v31 = vld [vmem:[#allocation10 + $0xc8] ss:$16 sps:$4 sm:$0xff]  }
 0x1ab   : > { %2864 = vmatprep.subr.bf16.mxu1 %v6076_v0 }
 0x1ac   : > { %v1951_v1 = vpop.f32.mrf.mxu0 }
 0x1ad   : > { %v1992_v2 = vpop.f32.mrf.mxu1  ;;  %v1952_v38 = vadd.f32 %v1951_v1, %v755_v36  ;;  %v7123_v1 = vsub.s32 3, %v7105_v33  ;;  %v6088_v36 = vld [vmem:[#allocation10 + $0xac] ss:$16 sps:$4 sm:$0xff]  }
 0x1ae   : > { %v1953_v3 = vpop.f32.mrf.mxu0 }
 0x1af   : > { %v1994_v4 = vpop.f32.mrf.mxu1  ;;  %v1954_v39 = vadd.f32 %v1953_v3, %v759_v37  ;;  %v1993_v40 = vadd.f32 %v1992_v2, %v1952_v38  ;;  %v763_v2 = vrot.slane %v750_v7, %v7120_v6  ;;  %v767_v3 = vrot.slane %v750_v7, %v7123_v1  ;;  %v6085_v7 = vld [vmem:[#allocation10 + $0xa4] ss:$16 sps:$4 sm:$0xff]   ;;  %v6083_v37 = vld [vmem:[#allocation10 + $0xa0] ss:$16 sps:$4 sm:$0xff]   ;;  %v6086_v38 = vld [vmem:[#allocation10 + $0xa8] ss:$16 sps:$4 sm:$0xff]  }
 0x1b0   : > { %v1955_v35 = vpop.f32.mrf.mxu0 }
 0x1b1   : > { %v1996_v5 = vpop.f32.mrf.mxu1  ;;  %v1995_v42 = vadd.f32 %v1994_v4, %v1954_v39  ;;  %v6091_v39 = vld [vmem:[#allocation10 + $0x84] ss:$16 sps:$4 sm:$0xff]  }
 0x1b2   : > { %v1956_v8 = vpop.f32.mrf.mxu0 }
 0x1b3   : > { %v1997_v9 = vpop.f32.mrf.mxu1 }
 0x1cd   : > { %v2074_v24 = vpop.f32.mrf.mxu1 }
 0x1cf   : > { %v2076_v25 = vpop.f32.mrf.mxu1 }
 0x1d1   : > { %v2078_v28 = vpop.f32.mrf.mxu1 }
 0x1d2   : > { %v6079_v28 = vld [vmem:[#allocation10 + $0xc4] ss:$16 sps:$4 sm:$0xff]  }
 0x1d3   : > { %v2079_v29 = vpop.f32.mrf.mxu1 }
 0x1d4   : > { %v6082_v29 = vld [vmem:[#allocation10 + $0xcc] ss:$16 sps:$4 sm:$0xff]  }
 0x1ec   : > { %v2033_v41 = vpop.f32.mrf.mxu0 }
 0x1ed   : > { %v2034_v43 = vadd.f32 %v2033_v41, %v1993_v40  ;;  %v6094_v40 = vld [vmem:[#allocation10 + $0x8c] ss:$16 sps:$4 sm:$0xff]   ;;  %v6089_v41 = vld [vmem:[#allocation10 + $0x80] ss:$16 sps:$4 sm:$0xff]  }
 0x1ee   : > { %v2035_v44 = vpop.f32.mrf.mxu0 }
 0x1ef   : > { %v2075_v45 = vadd.f32 %v2074_v24, %v2034_v43  ;;  %v2036_v46 = vadd.f32 %v2035_v44, %v1995_v42  ;;  %v6097_v42 = vld [vmem:[#allocation10 + $0x64] ss:$16 sps:$4 sm:$0xff]   ;;  %v6095_v43 = vld [vmem:[#allocation10 + $0x60] ss:$16 sps:$4 sm:$0xff]   ;;  %v6098_v44 = vld [vmem:[#allocation10 + $0x68] ss:$16 sps:$4 sm:$0xff]  }
 0x1f0   : > { %v2037_v48 = vpop.f32.mrf.mxu0 }
 0x1f1   : > { %v2077_v49 = vadd.f32 %v2076_v25, %v2036_v46  ;;  %v2245_v50 = vmax.f32 %v2075_v45, 0.0  ;;  %v6100_v45 = vld [vmem:[#allocation10 + $0x6c] ss:$16 sps:$4 sm:$0xff]   ;;  %v6103_v46 = vld [vmem:[#allocation10 + $0x44] ss:$16 sps:$4 sm:$0xff]  }
 0x1f2   : > { %v2038_v52 = vpop.f32.mrf.mxu0  ;;  %v6106_v48 = vld [vmem:[#allocation10 + $0x4c] ss:$16 sps:$4 sm:$0xff]  }
 0x1f3   : > { %v2246_v53 = vmax.f32 %v2077_v49, 0.0  ;;  %v2249_v55 = vpack.c.bf16 %v2245_v50, %v2245_v50  ;;  %v6101_v49 = vld [vmem:[#allocation10 + $0x40] ss:$16 sps:$4 sm:$0xff]   ;;  %v6104_v50 = vld [vmem:[#allocation10 + $0x48] ss:$16 sps:$4 sm:$0xff]  }
 0x1f4   : > { %v6109_v52 = vld [vmem:[#allocation10 + $0x24] ss:$16 sps:$4 sm:$0xff]  }
 0x1f5   : > { %v2250_v54 = vpack.c.bf16 %v2246_v53, %v2246_v53  ;;  %v6112_v53 = vld [vmem:[#allocation10 + $0x2c] ss:$16 sps:$4 sm:$0xff]  }
 0x1f7   : > { %2548 = vmatprep.mubr.bf16.mxu0 %v2250_v54  ;;  %v6107_v54 = vld [vmem:[#allocation10 + $0x20] ss:$16 sps:$4 sm:$0xff]  }
 0x1f8   : > { %2549 = vmatmul.mubr.bf16.vlgmr.msra.gmra.mxu0 %v2249_v55  ;;  %v6110_v55 = vld [vmem:[#allocation10 + $0x28] ss:$16 sps:$4 sm:$0xff]  }
 0x1f9   : > { %2855 = vmatprep.mubr.bf16.mxu0 %v6781_v16  ;;  %2824 = vmatpush1.bf16.msra.mxu0 %v6071_v63 }
 0x1fa   : > { %2825 = vmatprep.subr.bf16.mxu0 %v6079_v28  ;;  %v6128_v28 = vld [vmem:[#allocation13 + $0x4d0] ss:$28 sps:$4 sm:$0xff]  }
 0x1fd   : > { %2826 = vmatpush1.bf16.msra.mxu0 %v6077_v30  ;;  %v6131_v30 = vld [vmem:[#allocation13 + $0x118] ss:$28 sps:$4 sm:$0xff]  }
 0x1fe   : > { %2827 = vmatprep.subr.bf16.mxu0 %v6085_v7  ;;  %v6139_v7 = vld [vmem:[#allocation13 + $0xe4] ss:$28 sps:$4 sm:$0xff]  }
 0x201   : > { %2828 = vmatpush1.bf16.msra.mxu0 %v6083_v37  ;;  %v6137_v37 = vld [vmem:[#allocation13 + $0xe0] ss:$28 sps:$4 sm:$0xff]  }
 0x202   : > { %2829 = vmatprep.subr.bf16.mxu0 %v6091_v39  ;;  %v6145_v39 = vld [vmem:[#allocation13 + $0xac] ss:$28 sps:$4 sm:$0xff]  }
 0x205   : > { %2830 = vmatpush1.bf16.msra.mxu0 %v6089_v41  ;;  %v6143_v41 = vld [vmem:[#allocation13 + $0xa8] ss:$28 sps:$4 sm:$0xff]  }
 0x206   : > { %2831 = vmatprep.subr.bf16.mxu0 %v6097_v42  ;;  %v6151_v42 = vld [vmem:[#allocation13 + $0x74] ss:$28 sps:$4 sm:$0xff]  }
 0x209   : > { %2832 = vmatpush1.bf16.msra.mxu0 %v6095_v43  ;;  %v6154_v43 = vld [vmem:[#allocation13 + $0x3f4] ss:$28 sps:$4 sm:$0xff]  }
 0x20a   : > { %2833 = vmatprep.subr.bf16.mxu0 %v6103_v46  ;;  %v6157_v46 = vld [vmem:[#allocation13 + $0x3c] ss:$28 sps:$4 sm:$0xff]  }
 0x20d   : > { %v2115_v56 = vpop.f32.mrf.mxu1  ;;  %2834 = vmatpush1.bf16.msra.mxu0 %v6101_v49  ;;  %v6155_v49 = vld [vmem:[#allocation13 + $0x38] ss:$28 sps:$4 sm:$0xff]  }
 0x20e   : > { %v2116_v4 = vadd.f32 %v2115_v56, %v763_v2  ;;  %2835 = vmatprep.subr.bf16.mxu0 %v6109_v52  ;;  %v6115_v56 = vld [vmem:[#allocation10 + $0x4] ss:$16 sps:$4 sm:$0xff]   ;;  %v5188_v2 = vld [vmem:[%s7259_s5] ss:$0 sm:$0xff] }
 0x20f   : > { %v2117_v57 = vpop.f32.mrf.mxu1  ;;  %v6163_v52 = vld [vmem:[#allocation13 + $0x4] ss:$28 sps:$4 sm:$0xff]  }
 0x210   : > { %v2118_v35 = vadd.f32 %v2117_v57, %v767_v3  ;;  %v6118_v57 = vld [vmem:[#allocation10 + $0xc] ss:$16 sps:$4 sm:$0xff]  }
 0x211   : > { %v2119_v58 = vpop.f32.mrf.mxu1  ;;  %2836 = vmatpush1.bf16.msra.mxu0 %v6107_v54  ;;  %v6161_v54 = vld [vmem:[#allocation13] ss:$28 sps:$4 sm:$0xff]  }
 0x212   : > { %v6113_v58 = vld [vmem:[#allocation10] ss:$16 sps:$4 sm:$0xff]   ;;  %2837 = vmatprep.subr.bf16.mxu0 %v6115_v56 }
 0x213   : > { %v2120_v59 = vpop.f32.mrf.mxu1  ;;  %v6169_v56 = vld [vmem:[#allocation13 + $0x34c] ss:$28 sps:$4 sm:$0xff]  }
 0x214   : > { %v6116_v59 = vld [vmem:[#allocation10 + $0x8] ss:$16 sps:$4 sm:$0xff]  }
 0x215   : > { %2838 = vmatpush1.bf16.msra.mxu0 %v6113_v58  ;;  %v6167_v58 = vld [vmem:[#allocation13 + $0x348] ss:$28 sps:$4 sm:$0xff]  }
 0x22c   : > { %v2156_v60 = vpop.f32.mrf.mxu0 }
 0x22d   : > { %v2157_v5 = vadd.f32 %v2156_v60, %v2116_v4  ;;  %v6121_v60 = vld [vmem:[#allocation13 + $0x18c] ss:$28 sps:$4 sm:$0xff]  }
 0x22e   : > { %v2158_v61 = vpop.f32.mrf.mxu0  ;;  %4358 = vmatprep.subr.bf16.mxu0 %v6121_v60  ;;  %v6175_v60 = vld [vmem:[#allocation13 + $0x314] ss:$28 sps:$4 sm:$0xff]  }
 0x22f   : > { %v2159_v10 = vadd.f32 %v2158_v61, %v2118_v35 }
 0x230   : > { %v2160_v62 = vpop.f32.mrf.mxu0 }
 0x231   : > { %v6124_v62 = vld [vmem:[#allocation13 + $0x50c] ss:$28 sps:$4 sm:$0xff]  }
 0x232   : > { %v2161_v47 = vpop.f32.mrf.mxu0 }
 0x24c   : > { %v2238_v9 = vpop.f32.mrf.mxu0 }
 0x24d   : > { %v2197_v8 = vpop.f32.mrf.mxu1 }
 0x24e   : > { %v2198_v11 = vadd.f32 %v2197_v8, %v2157_v5  ;;  %v2240_v13 = vpop.f32.mrf.mxu0 }
 0x24f   : > { %v2199_v12 = vpop.f32.mrf.mxu1 }
 0x250   : > { %v2239_v14 = vadd.f32 %v2238_v9, %v2198_v11  ;;  %v2200_v17 = vadd.f32 %v2199_v12, %v2159_v10  ;;  %v2242_v19 = vpop.f32.mrf.mxu0 }
 0x251   : > { %v2201_v18 = vpop.f32.mrf.mxu1 }
 0x252   : > { %v2241_v20 = vadd.f32 %v2240_v13, %v2200_v17  ;;  %v2247_v21 = vmax.f32 %v2239_v14, 0.0  ;;  %v2243_v23 = vpop.f32.mrf.mxu0  ;;  %v2601_v13 = vld [vmem:[%s7049_s2] sm:$0xf]  ;;  %v2598_v14 = vand.u32 127, %v752_v32  ;;  %s4739_s2 = scalar_lea.sflag [#allocation16], %s7037_s0 }
 0x253   : > { %v2202_v22 = vpop.f32.mrf.mxu1  ;;  %v2602_v17 = vunpack.c.l.bf16 %v2601_v13  ;;  %v6122_v23 = vld [vmem:[#allocation13 + $0x508] ss:$28 sps:$4 sm:$0xff]   ;;  %v6133_v32 = vld [vmem:[#allocation13 + $0x11c] ss:$28 sps:$4 sm:$0xff]   ;;  %v6202_v13 = vld [vmem:[#allocation13 + $0x5b4] ss:$28 sps:$4 sm:$0xff]  }
 0x254   : > { %v2248_v24 = vmax.f32 %v2241_v20, 0.0  ;;  %v2251_v27 = vpack.c.bf16 %v2247_v21, %v2247_v21  ;;  %vm2599_vm0 = vcmp.lt.s32.totalorder %v2598_v14, 64  ;;  %v6119_v22 = vld [vmem:[#allocation13 + $0x188] ss:$28 sps:$4 sm:$0xff]   ;;  %v6197_v14 = vld [vmem:[#allocation13 + $0x230] ss:$28 sps:$4 sm:$0xff]  }
 0x256   : > { %v2252_v25 = vpack.c.bf16 %v2248_v24, %v2248_v24 }
 0x258   : > { %2588 = vmatprep.mubr.bf16.mxu1 %v2252_v25  ;;  %v6127_v25 = vld [vmem:[#allocation13 + $0x154] ss:$28 sps:$4 sm:$0xff]  }
 0x259   : > { %2589 = vmatmul.mubr.bf16.vlgmr.msra.gmra.mxu1 %v2251_v27  ;;  %v6125_v27 = vld [vmem:[#allocation13 + $0x150] ss:$28 sps:$4 sm:$0xff]  }
 0x25a   : > { %2865 = vmatpush1.bf16.msra.mxu1 %v6074_v26  ;;  %2896 = vmatprep.mubr.bf16.mxu1 %v6781_v16  ;;  %v6092_v16 = vld [vmem:[#allocation10 + $0x88] ss:$16 sps:$4 sm:$0xff]  }
 0x25b   : > { %2866 = vmatprep.subr.bf16.mxu1 %v6082_v29  ;;  %v6130_v26 = vld [vmem:[#allocation13 + $0x4d4] ss:$28 sps:$4 sm:$0xff]   ;;  %v6136_v29 = vld [vmem:[#allocation13 + $0x49c] ss:$28 sps:$4 sm:$0xff]  }
 0x25e   : > { %2867 = vmatpush1.bf16.msra.mxu1 %v6080_v31  ;;  %v6134_v31 = vld [vmem:[#allocation13 + $0x498] ss:$28 sps:$4 sm:$0xff]  }
 0x25f   : > { %2868 = vmatprep.subr.bf16.mxu1 %v6088_v36  ;;  %v6142_v36 = vld [vmem:[#allocation13 + $0x464] ss:$28 sps:$4 sm:$0xff]  }
 0x262   : > { %2869 = vmatpush1.bf16.msra.mxu1 %v6086_v38  ;;  %v6140_v38 = vld [vmem:[#allocation13 + $0x460] ss:$28 sps:$4 sm:$0xff]  }
 0x263   : > { %2870 = vmatprep.subr.bf16.mxu1 %v6094_v40  ;;  %v6148_v40 = vld [vmem:[#allocation13 + $0x42c] ss:$28 sps:$4 sm:$0xff]  }
 0x266   : > { %2871 = vmatpush1.bf16.msra.mxu1 %v6092_v16  ;;  %v6146_v16 = vld [vmem:[#allocation13 + $0x428] ss:$28 sps:$4 sm:$0xff]  }
 0x267   : > { %2872 = vmatprep.subr.bf16.mxu1 %v6100_v45  ;;  %v6152_v45 = vld [vmem:[#allocation13 + $0x3f0] ss:$28 sps:$4 sm:$0xff]  }
 0x26a   : > { %2873 = vmatpush1.bf16.msra.mxu1 %v6098_v44  ;;  %v6149_v44 = vld [vmem:[#allocation13 + $0x70] ss:$28 sps:$4 sm:$0xff]  }
 0x26b   : > { %2874 = vmatprep.subr.bf16.mxu1 %v6106_v48  ;;  %v6160_v48 = vld [vmem:[#allocation13 + $0x3bc] ss:$28 sps:$4 sm:$0xff]  }
 0x26e   : > { %2875 = vmatpush1.bf16.msra.mxu1 %v6104_v50  ;;  %v6158_v50 = vld [vmem:[#allocation13 + $0x3b8] ss:$28 sps:$4 sm:$0xff]  }
 0x26f   : > { %2876 = vmatprep.subr.bf16.mxu1 %v6112_v53  ;;  %v6166_v53 = vld [vmem:[#allocation13 + $0x384] ss:$28 sps:$4 sm:$0xff]  }
 0x272   : > { %2877 = vmatpush1.bf16.msra.mxu1 %v6110_v55  ;;  %v6164_v55 = vld [vmem:[#allocation13 + $0x380] ss:$28 sps:$4 sm:$0xff]  }
 0x273   : > { %2878 = vmatprep.subr.bf16.mxu1 %v6118_v57  ;;  %v6172_v57 = vld [vmem:[#allocation13 + $0x6cc] ss:$28 sps:$4 sm:$0xff]  }
 0x276   : > { %2879 = vmatpush1.bf16.msra.mxu1 %v6116_v59  ;;  %v6170_v59 = vld [vmem:[#allocation13 + $0x6c8] ss:$28 sps:$4 sm:$0xff]  }
 0x277   : > { %4399 = vmatprep.subr.bf16.mxu1 %v6124_v62  ;;  %v6173_v62 = vld [vmem:[#allocation13 + $0x310] ss:$28 sps:$4 sm:$0xff]  }
 0x2b8   : > { %v5505_v61 = vpop.f32.mrf.mxu0 }
 0x2ba   : > { %v5506_v47 = vpop.f32.mrf.mxu0 }
 0x2bb   : > { %v5507_v63 = vadd.f32 %v5506_v47, %v5505_v61  ;;  %v6178_v61 = vld [vmem:[#allocation13 + $0x694] ss:$28 sps:$4 sm:$0xff]  }
 0x2bc   : > { %v5508_v15 = vpop.f32.mrf.mxu0  ;;  %v6176_v47 = vld [vmem:[#allocation13 + $0x690] ss:$28 sps:$4 sm:$0xff]  }
 0x2bd   : > { %v2551_v35 = vadd.f32 %v5507_v63, %v5188_v2  ;;  %v6181_v63 = vld [vmem:[#allocation13 + $0x2dc] ss:$28 sps:$4 sm:$0xff]  }
 0x2be   : > { %v5509_v0 = vpop.f32.mrf.mxu0  ;;  %v6184_v15 = vld [vmem:[#allocation13 + $0x65c] ss:$28 sps:$4 sm:$0xff]  }
 0x2bf   : > { %v6179_v0 = vld [vmem:[#allocation13 + $0x2d8] ss:$28 sps:$4 sm:$0xff]  }
 0x2c0   : > { %v6182_v2 = vld [vmem:[#allocation13 + $0x658] ss:$28 sps:$4 sm:$0xff]  }
 0x319   : > { %v5527_v3 = vpop.f32.mrf.mxu1 }
 0x31b   : > { %v5528_v4 = vpop.f32.mrf.mxu1 }
 0x31c   : > { %v5529_v5 = vadd.f32 %v5528_v4, %v5527_v3  ;;  %v6187_v3 = vld [vmem:[#allocation13 + $0x2a4] ss:$28 sps:$4 sm:$0xff]  }
 0x31d   : > { %v5530_v8 = vpop.f32.mrf.mxu1  ;;  %v6190_v4 = vld [vmem:[#allocation13 + $0x624] ss:$28 sps:$4 sm:$0xff]  }
 0x31e   : > { %v2591_v9 = vadd.f32 %v5529_v5, %v2551_v35  ;;  %v6185_v35 = vld [vmem:[#allocation13 + $0x2a0] ss:$28 sps:$4 sm:$0xff]   ;;  %v6193_v8 = vld [vmem:[#allocation13 + $0x26c] ss:$28 sps:$4 sm:$0xff]  }
 0x31f   : > { %v5531_v10 = vpop.f32.mrf.mxu1  ;;  %v6188_v5 = vld [vmem:[#allocation13 + $0x620] ss:$28 sps:$4 sm:$0xff]  }
 0x320   : > { %v2603_v11 = vmul.f32 0.5, %v2591_v9  ;;  %2596 = vst [vmem:[%s7132_s7] sm:$0xff] %v2591_v9  ;;  %v2600_v20 = vsel %vm2599_vm0, %v2591_v9, 0.0  ;;  %v6196_v9 = vld [vmem:[#allocation13 + $0x5ec] ss:$28 sps:$4 sm:$0xff]  }
 0x321   : > { %v6191_v10 = vld [vmem:[#allocation13 + $0x268] ss:$28 sps:$4 sm:$0xff]  }
 0x322   : > { %v2604_v12 = vmul.f32 1.442695, %v2603_v11  ;;  %v6194_v11 = vld [vmem:[#allocation13 + $0x5e8] ss:$28 sps:$4 sm:$0xff]  }
 0x324   : > { %6439 = vpow2.f32 %v2604_v12  ;;  %v6199_v12 = vld [vmem:[#allocation13 + $0x234] ss:$28 sps:$4 sm:$0xff]  }
 0x331   : > { %v6440_v18 = vpop.eup %6439 }
 0x332   : > { %v2606_v19 = vmul.f32 %v6440_v18, %v2602_v17  ;;  %v6200_v17 = vld [vmem:[#allocation13 + $0x5b0] ss:$28 sps:$4 sm:$0xff]   ;;  %v6205_v18 = vld [vmem:[#allocation13 + $0x1fc] ss:$28 sps:$4 sm:$0xff]  }
 0x334   : > { %v2607_v21 = vadd.f32 %v2606_v19, %v2600_v20  ;;  %v6208_v19 = vld [vmem:[#allocation13 + $0x57c] ss:$28 sps:$4 sm:$0xff]  }
 0x335   : > { %v6203_v20 = vld [vmem:[#allocation13 + $0x1f8] ss:$28 sps:$4 sm:$0xff]  }
 0x336   : > { %v2608_v24 = vpack.c.bf16 %v2607_v21, %v2607_v21  ;;  %v6206_v21 = vld [vmem:[#allocation13 + $0x578] ss:$28 sps:$4 sm:$0xff]  }
 0x338   : > { %2856 = vmatmul.mubr.bf16.vlgmr.msra.gmra.mxu0 %v2608_v24  ;;  %2897 = vmatmul.mubr.bf16.vlgmr.msra.gmra.mxu1 %v2608_v24  ;;  %v6209_v24 = vld [vmem:[#allocation13 + $0x1c0] ss:$28 sps:$4 sm:$0xff]  }
 0x339   : > { %4359 = vmatpush1.bf16.msra.mxu0 %v6119_v22  ;;  %4400 = vmatpush1.bf16.msra.mxu1 %v6122_v23  ;;  %v6211_v22 = vld [vmem:[#allocation13 + $0x1c4] ss:$28 sps:$4 sm:$0xff]  }
 0x33a   : > { %4360 = vmatprep.subr.bf16.mxu0 %v6127_v25  ;;  %4401 = vmatprep.subr.bf16.mxu1 %v6130_v26  ;;  %v6214_v23 = vld [vmem:[#allocation13 + $0x544] ss:$28 sps:$4 sm:$0xff]   ;;  %v6217_v26 = vld [vmem:[#allocation13 + $0x194] ss:$28 sps:$4 sm:$0xff]  }
 0x33b   : > { %v6212_v25 = vld [vmem:[#allocation13 + $0x540] ss:$28 sps:$4 sm:$0xff]  }
 0x33d   : > { %4361 = vmatpush1.bf16.msra.mxu0 %v6125_v27  ;;  %4402 = vmatpush1.bf16.msra.mxu1 %v6128_v28  ;;  %v6220_v27 = vld [vmem:[#allocation13 + $0x514] ss:$28 sps:$4 sm:$0xff]   ;;  %v2641_v28 = vld [vmem:[#allocation11] sm:$0xf] }
 0x33e   : > { %4362 = vmatprep.subr.bf16.mxu0 %v6133_v32  ;;  %4403 = vmatprep.subr.bf16.mxu1 %v6136_v29  ;;  %v2646_v32 = vrot.slane %v2641_v28, %v7108_v51  ;;  %v2654_v29 = vrot.slane %v2641_v28, %v7120_v6 }
 0x341   : > { %4363 = vmatpush1.bf16.msra.mxu0 %v6131_v30  ;;  %4404 = vmatpush1.bf16.msra.mxu1 %v6134_v31  ;;  %v2650_v30 = vrot.slane %v2641_v28, %v7114_v34  ;;  %v2658_v31 = vrot.slane %v2641_v28, %v7123_v1  ;;  %v6271_v28 = vld [vmem:[#allocation13 + $0x31c] ss:$28 sps:$4 sm:$0xff]  }
 0x342   : > { %4364 = vmatprep.subr.bf16.mxu0 %v6139_v7  ;;  %4405 = vmatprep.subr.bf16.mxu1 %v6142_v36 }
 0x345   : > { %4365 = vmatpush1.bf16.msra.mxu0 %v6137_v37  ;;  %4406 = vmatpush1.bf16.msra.mxu1 %v6140_v38 }
 0x346   : > { %4366 = vmatprep.subr.bf16.mxu0 %v6145_v39  ;;  %4407 = vmatprep.subr.bf16.mxu1 %v6148_v40 }
 0x349   : > { %4367 = vmatpush1.bf16.msra.mxu0 %v6143_v41  ;;  %4408 = vmatpush1.bf16.msra.mxu1 %v6146_v16 }
 0x34a   : > { %4368 = vmatprep.subr.bf16.mxu0 %v6151_v42  ;;  %4409 = vmatprep.subr.bf16.mxu1 %v6154_v43 }
 0x34d   : > { %4369 = vmatpush1.bf16.msra.mxu0 %v6149_v44  ;;  %4410 = vmatpush1.bf16.msra.mxu1 %v6152_v45 }
 0x34e   : > { %4370 = vmatprep.subr.bf16.mxu0 %v6157_v46  ;;  %4411 = vmatprep.subr.bf16.mxu1 %v6160_v48 }
 0x351   : > { %4371 = vmatpush1.bf16.msra.mxu0 %v6155_v49  ;;  %4412 = vmatpush1.bf16.msra.mxu1 %v6158_v50 }
 0x352   : > { %4372 = vmatprep.subr.bf16.mxu0 %v6163_v52  ;;  %4413 = vmatprep.subr.bf16.mxu1 %v6166_v53 }
 0x355   : > { %4373 = vmatpush1.bf16.msra.mxu0 %v6161_v54  ;;  %4414 = vmatpush1.bf16.msra.mxu1 %v6164_v55  ;;  %v6215_v54 = vld [vmem:[#allocation13 + $0x190] ss:$28 sps:$4 sm:$0xff]  }
 0x356   : > { %4374 = vmatprep.subr.bf16.mxu0 %v6169_v56  ;;  %4415 = vmatprep.subr.bf16.mxu1 %v6172_v57  ;;  %v6218_v55 = vld [vmem:[#allocation13 + $0x510] ss:$28 sps:$4 sm:$0xff]  }
 0x359   : > { %4375 = vmatpush2.bf16.msra.mxu0 %v6167_v58  ;;  %4416 = vmatpush2.bf16.msra.mxu1 %v6170_v59  ;;  %v6223_v58 = vld [vmem:[#allocation13 + $0x15c] ss:$28 sps:$4 sm:$0xff]  }
 0x35a   : > { %4376 = vmatprep.subr.bf16.mxu0 %v6175_v60  ;;  %4417 = vmatprep.subr.bf16.mxu1 %v6178_v61  ;;  %v6226_v59 = vld [vmem:[#allocation13 + $0x4dc] ss:$28 sps:$4 sm:$0xff]  }
 0x35b   : > { %v6221_v60 = vld [vmem:[#allocation13 + $0x158] ss:$28 sps:$4 sm:$0xff]  }
 0x35c   : > { %v6224_v61 = vld [vmem:[#allocation13 + $0x4d8] ss:$28 sps:$4 sm:$0xff]  }
 0x35d   : > { %4377 = vmatpush2.bf16.msra.mxu0 %v6173_v62  ;;  %4418 = vmatpush2.bf16.msra.mxu1 %v6176_v47  ;;  %v6229_v62 = vld [vmem:[#allocation13 + $0x124] ss:$28 sps:$4 sm:$0xff]  }
 0x35e   : > { %4378 = vmatprep.subr.bf16.mxu0 %v6181_v63  ;;  %4419 = vmatprep.subr.bf16.mxu1 %v6184_v15  ;;  %v6232_v47 = vld [vmem:[#allocation13 + $0x4a4] ss:$28 sps:$4 sm:$0xff]  }
 0x35f   : > { %v6227_v63 = vld [vmem:[#allocation13 + $0x120] ss:$28 sps:$4 sm:$0xff]  }
 0x360   : > { %v6230_v15 = vld [vmem:[#allocation13 + $0x4a0] ss:$28 sps:$4 sm:$0xff]  }
 0x361   : > { %4379 = vmatpush2.bf16.msra.mxu0 %v6179_v0  ;;  %4420 = vmatpush2.bf16.msra.mxu1 %v6182_v2  ;;  %v6235_v0 = vld [vmem:[#allocation13 + $0xec] ss:$28 sps:$4 sm:$0xff]  }
 0x362   : > { %4380 = vmatprep.subr.bf16.mxu0 %v6187_v3  ;;  %4421 = vmatprep.subr.bf16.mxu1 %v6190_v4  ;;  %v6238_v2 = vld [vmem:[#allocation13 + $0x46c] ss:$28 sps:$4 sm:$0xff]  }
 0x363   : > { %v6233_v3 = vld [vmem:[#allocation13 + $0xe8] ss:$28 sps:$4 sm:$0xff]  }
 0x364   : > { %v6236_v4 = vld [vmem:[#allocation13 + $0x468] ss:$28 sps:$4 sm:$0xff]  }
 0x365   : > { %4381 = vmatpush2.bf16.msra.mxu0 %v6185_v35  ;;  %4422 = vmatpush2.bf16.msra.mxu1 %v6188_v5  ;;  %v6241_v35 = vld [vmem:[#allocation13 + $0xb4] ss:$28 sps:$4 sm:$0xff]  }
 0x366   : > { %4382 = vmatprep.subr.bf16.mxu0 %v6193_v8  ;;  %4423 = vmatprep.subr.bf16.mxu1 %v6196_v9  ;;  %v6244_v5 = vld [vmem:[#allocation13 + $0x434] ss:$28 sps:$4 sm:$0xff]  }
 0x367   : > { %v6239_v8 = vld [vmem:[#allocation13 + $0xb0] ss:$28 sps:$4 sm:$0xff]  }
 0x368   : > { %v6242_v9 = vld [vmem:[#allocation13 + $0x430] ss:$28 sps:$4 sm:$0xff]  }
 0x369   : > { %4383 = vmatpush2.bf16.msra.mxu0 %v6191_v10  ;;  %4424 = vmatpush2.bf16.msra.mxu1 %v6194_v11  ;;  %v6247_v10 = vld [vmem:[#allocation13 + $0x7c] ss:$28 sps:$4 sm:$0xff]  }
 0x36a   : > { %4384 = vmatprep.subr.bf16.mxu0 %v6199_v12  ;;  %4425 = vmatprep.subr.bf16.mxu1 %v6202_v13  ;;  %v6250_v11 = vld [vmem:[#allocation13 + $0x3fc] ss:$28 sps:$4 sm:$0xff]  }
 0x36b   : > { %v6245_v12 = vld [vmem:[#allocation13 + $0x78] ss:$28 sps:$4 sm:$0xff]  }
 0x36c   : > { %v6248_v13 = vld [vmem:[#allocation13 + $0x3f8] ss:$28 sps:$4 sm:$0xff]  }
 0x36d   : > { %4385 = vmatpush2.bf16.msra.mxu0 %v6197_v14  ;;  %4426 = vmatpush2.bf16.msra.mxu1 %v6200_v17  ;;  %v6253_v14 = vld [vmem:[#allocation13 + $0x44] ss:$28 sps:$4 sm:$0xff]  }
 0x36e   : > { %4386 = vmatprep.subr.bf16.mxu0 %v6205_v18  ;;  %4427 = vmatprep.subr.bf16.mxu1 %v6208_v19  ;;  %v6256_v17 = vld [vmem:[#allocation13 + $0x3c4] ss:$28 sps:$4 sm:$0xff]  }
 0x36f   : > { %v6251_v18 = vld [vmem:[#allocation13 + $0x40] ss:$28 sps:$4 sm:$0xff]  }
 0x370   : > { %v6254_v19 = vld [vmem:[#allocation13 + $0x3c0] ss:$28 sps:$4 sm:$0xff]  }
 0x371   : > { %4387 = vmatpush2.bf16.msra.mxu0 %v6203_v20  ;;  %4428 = vmatpush2.bf16.msra.mxu1 %v6206_v21  ;;  %v6259_v20 = vld [vmem:[#allocation13 + $0xc] ss:$28 sps:$4 sm:$0xff]  }
 0x372   : > { %4388 = vmatprep.subr.bf16.mxu0 %v6211_v22  ;;  %4429 = vmatprep.subr.bf16.mxu1 %v6214_v23  ;;  %v6262_v21 = vld [vmem:[#allocation13 + $0x38c] ss:$28 sps:$4 sm:$0xff]  }
 0x373   : > { %v6257_v22 = vld [vmem:[#allocation13 + $0x8] ss:$28 sps:$4 sm:$0xff]  }
 0x374   : > { %v6260_v23 = vld [vmem:[#allocation13 + $0x388] ss:$28 sps:$4 sm:$0xff]  }
 0x375   : > { %4389 = vmatpush2.bf16.msra.mxu0 %v6209_v24  ;;  %4430 = vmatpush2.bf16.msra.mxu1 %v6212_v25  ;;  %v6265_v24 = vld [vmem:[#allocation13 + $0x354] ss:$28 sps:$4 sm:$0xff]  }
 0x376   : > { %4440 = vmatprep.subr.bf16.mxu0 %v6217_v26  ;;  %4481 = vmatprep.subr.bf16.mxu1 %v6220_v27  ;;  %v6268_v25 = vld [vmem:[#allocation13 + $0x6d4] ss:$28 sps:$4 sm:$0xff]  }
 0x377   : > { %v6263_v26 = vld [vmem:[#allocation13 + $0x350] ss:$28 sps:$4 sm:$0xff]  }
 0x378   : > { %v6266_v27 = vld [vmem:[#allocation13 + $0x6d0] ss:$28 sps:$4 sm:$0xff]  }
 0x3f8   : > { %v2857_v7 = vpop.f32.mrf.mxu0  ;;  %v2898_v36 = vpop.f32.mrf.mxu1 }
 0x3f9   : > { %v2858_v37 = vadd.f32 %v2857_v7, %v2646_v32  ;;  %v2899_v38 = vadd.f32 %v2898_v36, %v2654_v29  ;;  %v6274_v32 = vld [vmem:[#allocation13 + $0x69c] ss:$28 sps:$4 sm:$0xff]   ;;  %v6280_v7 = vld [vmem:[#allocation13 + $0x664] ss:$28 sps:$4 sm:$0xff]  }
 0x3fa   : > { %v2859_v39 = vpop.f32.mrf.mxu0  ;;  %v2900_v40 = vpop.f32.mrf.mxu1  ;;  %v6269_v29 = vld [vmem:[#allocation13 + $0x318] ss:$28 sps:$4 sm:$0xff]   ;;  %v6275_v36 = vld [vmem:[#allocation13 + $0x2e0] ss:$28 sps:$4 sm:$0xff]  }
 0x3fb   : > { %v2860_v41 = vadd.f32 %v2859_v39, %v2650_v30  ;;  %v2901_v16 = vadd.f32 %v2900_v40, %v2658_v31  ;;  %v2905_v42 = vmax.f32 %v2858_v37, 0.0  ;;  %v2907_v43 = vmax.f32 %v2899_v38, 0.0  ;;  %v6272_v30 = vld [vmem:[#allocation13 + $0x698] ss:$28 sps:$4 sm:$0xff]   ;;  %v6277_v31 = vld [vmem:[#allocation13 + $0x2e4] ss:$28 sps:$4 sm:$0xff]  }
 0x3fc   : > { %v2861_v44 = vpop.f32.mrf.mxu0  ;;  %v2902_v45 = vpop.f32.mrf.mxu1  ;;  %v6278_v37 = vld [vmem:[#allocation13 + $0x660] ss:$28 sps:$4 sm:$0xff]   ;;  %v6283_v38 = vld [vmem:[#allocation13 + $0x2ac] ss:$28 sps:$4 sm:$0xff]  }
 0x3fd   : > { %v2906_v46 = vmax.f32 %v2860_v41, 0.0  ;;  %v2908_v48 = vmax.f32 %v2901_v16, 0.0  ;;  %v7145_v56 = vpack.c.bf16 %v2905_v42, %v2905_v42  ;;  %v7147_v57 = vpack.c.bf16 %v2907_v43, %v2907_v43  ;;  %v6286_v39 = vld [vmem:[#allocation13 + $0x62c] ss:$28 sps:$4 sm:$0xff]   ;;  %v6289_v16 = vld [vmem:[#allocation13 + $0x274] ss:$28 sps:$4 sm:$0xff]  }
 0x3fe   : > { %v2862_v49 = vpop.f32.mrf.mxu0  ;;  %v2903_v50 = vpop.f32.mrf.mxu1  ;;  %v6281_v40 = vld [vmem:[#allocation13 + $0x2a8] ss:$28 sps:$4 sm:$0xff]   ;;  %v6292_v42 = vld [vmem:[#allocation13 + $0x5f4] ss:$28 sps:$4 sm:$0xff]   ;;  %v6295_v45 = vld [vmem:[#allocation13 + $0x23c] ss:$28 sps:$4 sm:$0xff]  }
 0x3ff   : > { %v7141_v52 = vpack.c.bf16 %v2906_v46, %v2906_v46  ;;  %v7143_v53 = vpack.c.bf16 %v2908_v48, %v2908_v48  ;;  %v6284_v41 = vld [vmem:[#allocation13 + $0x628] ss:$28 sps:$4 sm:$0xff]   ;;  %v6287_v43 = vld [vmem:[#allocation13 + $0x270] ss:$28 sps:$4 sm:$0xff]   ;;  %v6298_v46 = vld [vmem:[#allocation13 + $0x5bc] ss:$28 sps:$4 sm:$0xff]  }
 0x400   : > { %v6290_v44 = vld [vmem:[#allocation13 + $0x5f0] ss:$28 sps:$4 sm:$0xff]   ;;  %v6293_v48 = vld [vmem:[#allocation13 + $0x238] ss:$28 sps:$4 sm:$0xff]   ;;  %v6301_v50 = vld [vmem:[#allocation13 + $0x204] ss:$28 sps:$4 sm:$0xff]  }
 0x401   : > { %4390 = vmatprep.mubr.bf16.mxu0 %v7141_v52  ;;  %4431 = vmatprep.mubr.bf16.mxu1 %v7143_v53  ;;  %v6296_v49 = vld [vmem:[#allocation13 + $0x5b8] ss:$28 sps:$4 sm:$0xff]  }
 0x402   : > { %4391 = vmatmul.mubr.bf16.vlgmr.msra.gmra.mxu0 %v7145_v56  ;;  %4432 = vmatmul.mubr.bf16.vlgmr.msra.gmra.mxu1 %v7147_v57 }
 0x403   : > { %4441 = vmatpush1.bf16.msra.mxu0 %v6215_v54  ;;  %4482 = vmatpush1.bf16.msra.mxu1 %v6218_v55  ;;  %v6304_v54 = vld [vmem:[#allocation13 + $0x584] ss:$28 sps:$4 sm:$0xff]  }
 0x404   : > { %4472 = vmatprep.mubr.bf16.mxu0 %v7141_v52  ;;  %4513 = vmatprep.mubr.bf16.mxu1 %v7143_v53  ;;  %v6299_v55 = vld [vmem:[#allocation13 + $0x200] ss:$28 sps:$4 sm:$0xff]  }
 0x405   : > { %4442 = vmatprep.subr.bf16.mxu0 %v6223_v58  ;;  %4483 = vmatprep.subr.bf16.mxu1 %v6226_v59  ;;  %v6302_v58 = vld [vmem:[#allocation13 + $0x580] ss:$28 sps:$4 sm:$0xff]   ;;  %v6307_v59 = vld [vmem:[#allocation13 + $0x1cc] ss:$28 sps:$4 sm:$0xff]  }
 0x407   : > { %4443 = vmatpush1.bf16.msra.mxu0 %v6221_v60  ;;  %4484 = vmatpush1.bf16.msra.mxu1 %v6224_v61  ;;  %v6310_v60 = vld [vmem:[#allocation13 + $0x54c] ss:$28 sps:$4 sm:$0xff]  }
 0x408   : > { %4444 = vmatprep.subr.bf16.mxu0 %v6229_v62  ;;  %4485 = vmatprep.subr.bf16.mxu1 %v6232_v47  ;;  %v6305_v61 = vld [vmem:[#allocation13 + $0x1c8] ss:$28 sps:$4 sm:$0xff]   ;;  %v6313_v47 = vld [vmem:[#allocation13 + $0x19c] ss:$28 sps:$4 sm:$0xff]  }
 0x409   : > { %v6308_v62 = vld [vmem:[#allocation13 + $0x548] ss:$28 sps:$4 sm:$0xff]  }
 0x40b   : > { %4445 = vmatpush1.bf16.msra.mxu0 %v6227_v63  ;;  %4486 = vmatpush1.bf16.msra.mxu1 %v6230_v15  ;;  %v6316_v63 = vld [vmem:[#allocation13 + $0x51c] ss:$28 sps:$4 sm:$0xff]  }
 0x40c   : > { %4446 = vmatprep.subr.bf16.mxu0 %v6235_v0  ;;  %4487 = vmatprep.subr.bf16.mxu1 %v6238_v2  ;;  %v6311_v15 = vld [vmem:[#allocation13 + $0x198] ss:$28 sps:$4 sm:$0xff]   ;;  %v6319_v2 = vld [vmem:[#allocation13 + $0x164] ss:$28 sps:$4 sm:$0xff]  }
 0x40d   : > { %v6314_v0 = vld [vmem:[#allocation13 + $0x518] ss:$28 sps:$4 sm:$0xff]  }
 0x40f   : > { %4447 = vmatpush1.bf16.msra.mxu0 %v6233_v3  ;;  %4488 = vmatpush1.bf16.msra.mxu1 %v6236_v4  ;;  %v6322_v3 = vld [vmem:[#allocation13 + $0x4e4] ss:$28 sps:$4 sm:$0xff]  }
 0x410   : > { %4448 = vmatprep.subr.bf16.mxu0 %v6241_v35  ;;  %4489 = vmatprep.subr.bf16.mxu1 %v6244_v5  ;;  %v6317_v4 = vld [vmem:[#allocation13 + $0x160] ss:$28 sps:$4 sm:$0xff]   ;;  %v6325_v5 = vld [vmem:[#allocation13 + $0x12c] ss:$28 sps:$4 sm:$0xff]  }
 0x411   : > { %v6320_v35 = vld [vmem:[#allocation13 + $0x4e0] ss:$28 sps:$4 sm:$0xff]  }
 0x413   : > { %4449 = vmatpush1.bf16.msra.mxu0 %v6239_v8  ;;  %4490 = vmatpush1.bf16.msra.mxu1 %v6242_v9  ;;  %v6328_v8 = vld [vmem:[#allocation13 + $0x4ac] ss:$28 sps:$4 sm:$0xff]  }
 0x414   : > { %4450 = vmatprep.subr.bf16.mxu0 %v6247_v10  ;;  %4491 = vmatprep.subr.bf16.mxu1 %v6250_v11  ;;  %v6323_v9 = vld [vmem:[#allocation13 + $0x128] ss:$28 sps:$4 sm:$0xff]   ;;  %v6331_v11 = vld [vmem:[#allocation13 + $0xf4] ss:$28 sps:$4 sm:$0xff]  }
 0x415   : > { %v6326_v10 = vld [vmem:[#allocation13 + $0x4a8] ss:$28 sps:$4 sm:$0xff]  }
 0x417   : > { %4451 = vmatpush1.bf16.msra.mxu0 %v6245_v12  ;;  %4492 = vmatpush1.bf16.msra.mxu1 %v6248_v13  ;;  %v6334_v12 = vld [vmem:[#allocation13 + $0x474] ss:$28 sps:$4 sm:$0xff]  }
 0x418   : > { %4452 = vmatprep.subr.bf16.mxu0 %v6253_v14  ;;  %4493 = vmatprep.subr.bf16.mxu1 %v6256_v17  ;;  %v6329_v13 = vld [vmem:[#allocation13 + $0xf0] ss:$28 sps:$4 sm:$0xff]   ;;  %v6337_v17 = vld [vmem:[#allocation13 + $0xbc] ss:$28 sps:$4 sm:$0xff]  }
 0x419   : > { %v6332_v14 = vld [vmem:[#allocation13 + $0x470] ss:$28 sps:$4 sm:$0xff]  }
 0x41b   : > { %4453 = vmatpush1.bf16.msra.mxu0 %v6251_v18  ;;  %4494 = vmatpush1.bf16.msra.mxu1 %v6254_v19  ;;  %v6340_v18 = vld [vmem:[#allocation13 + $0x43c] ss:$28 sps:$4 sm:$0xff]  }
 0x41c   : > { %4454 = vmatprep.subr.bf16.mxu0 %v6259_v20  ;;  %4495 = vmatprep.subr.bf16.mxu1 %v6262_v21  ;;  %v6335_v19 = vld [vmem:[#allocation13 + $0xb8] ss:$28 sps:$4 sm:$0xff]   ;;  %v6343_v21 = vld [vmem:[#allocation13 + $0x84] ss:$28 sps:$4 sm:$0xff]  }
 0x41d   : > { %v6338_v20 = vld [vmem:[#allocation13 + $0x438] ss:$28 sps:$4 sm:$0xff]  }
 0x41f   : > { %4455 = vmatpush1.bf16.msra.mxu0 %v6257_v22  ;;  %4496 = vmatpush1.bf16.msra.mxu1 %v6260_v23  ;;  %v6346_v22 = vld [vmem:[#allocation13 + $0x404] ss:$28 sps:$4 sm:$0xff]  }
 0x420   : > { %4456 = vmatprep.subr.bf16.mxu0 %v6265_v24  ;;  %4497 = vmatprep.subr.bf16.mxu1 %v6268_v25  ;;  %v6341_v23 = vld [vmem:[#allocation13 + $0x80] ss:$28 sps:$4 sm:$0xff]   ;;  %v6349_v25 = vld [vmem:[#allocation13 + $0x4c] ss:$28 sps:$4 sm:$0xff]  }
 0x421   : > { %v6344_v24 = vld [vmem:[#allocation13 + $0x400] ss:$28 sps:$4 sm:$0xff]  }
 0x423   : > { %4457 = vmatpush2.bf16.msra.mxu0 %v6263_v26  ;;  %4498 = vmatpush2.bf16.msra.mxu1 %v6266_v27  ;;  %v6352_v26 = vld [vmem:[#allocation13 + $0x3cc] ss:$28 sps:$4 sm:$0xff]  }
 0x424   : > { %4458 = vmatprep.subr.bf16.mxu0 %v6271_v28  ;;  %4499 = vmatprep.subr.bf16.mxu1 %v6274_v32  ;;  %v6347_v27 = vld [vmem:[#allocation13 + $0x48] ss:$28 sps:$4 sm:$0xff]   ;;  %v6355_v32 = vld [vmem:[#allocation13 + $0x14] ss:$28 sps:$4 sm:$0xff]  }
 0x425   : > { %v6350_v28 = vld [vmem:[#allocation13 + $0x3c8] ss:$28 sps:$4 sm:$0xff]  }
 0x427   : > { %4459 = vmatpush2.bf16.msra.mxu0 %v6269_v29  ;;  %4500 = vmatpush2.bf16.msra.mxu1 %v6272_v30  ;;  %v6358_v29 = vld [vmem:[#allocation13 + $0x394] ss:$28 sps:$4 sm:$0xff]  }
 0x428   : > { %4460 = vmatprep.subr.bf16.mxu0 %v6277_v31  ;;  %4501 = vmatprep.subr.bf16.mxu1 %v6280_v7  ;;  %v6353_v30 = vld [vmem:[#allocation13 + $0x10] ss:$28 sps:$4 sm:$0xff]   ;;  %v6361_v7 = vld [vmem:[#allocation13 + $0x35c] ss:$28 sps:$4 sm:$0xff]  }
 0x429   : > { %v6356_v31 = vld [vmem:[#allocation13 + $0x390] ss:$28 sps:$4 sm:$0xff]  }
 0x42b   : > { %4461 = vmatpush2.bf16.msra.mxu0 %v6275_v36  ;;  %4502 = vmatpush2.bf16.msra.mxu1 %v6278_v37  ;;  %v6364_v36 = vld [vmem:[#allocation13 + $0x6dc] ss:$28 sps:$4 sm:$0xff]  }
 0x42c   : > { %4462 = vmatprep.subr.bf16.mxu0 %v6283_v38  ;;  %4503 = vmatprep.subr.bf16.mxu1 %v6286_v39  ;;  %v6359_v37 = vld [vmem:[#allocation13 + $0x358] ss:$28 sps:$4 sm:$0xff]   ;;  %v6367_v39 = vld [vmem:[#allocation13 + $0x324] ss:$28 sps:$4 sm:$0xff]  }
 0x42d   : > { %v6362_v38 = vld [vmem:[#allocation13 + $0x6d8] ss:$28 sps:$4 sm:$0xff]  }
 0x42f   : > { %4463 = vmatpush2.bf16.msra.mxu0 %v6281_v40  ;;  %4504 = vmatpush2.bf16.msra.mxu1 %v6284_v41  ;;  %v6370_v40 = vld [vmem:[#allocation13 + $0x6a4] ss:$28 sps:$4 sm:$0xff]  }
 0x430   : > { %4464 = vmatprep.subr.bf16.mxu0 %v6289_v16  ;;  %4505 = vmatprep.subr.bf16.mxu1 %v6292_v42  ;;  %v6365_v41 = vld [vmem:[#allocation13 + $0x320] ss:$28 sps:$4 sm:$0xff]   ;;  %v6373_v42 = vld [vmem:[#allocation13 + $0x2ec] ss:$28 sps:$4 sm:$0xff]  }
 0x431   : > { %v6368_v16 = vld [vmem:[#allocation13 + $0x6a0] ss:$28 sps:$4 sm:$0xff]  }
 0x433   : > { %4465 = vmatpush2.bf16.msra.mxu0 %v6287_v43  ;;  %4506 = vmatpush2.bf16.msra.mxu1 %v6290_v44  ;;  %v6376_v43 = vld [vmem:[#allocation13 + $0x66c] ss:$28 sps:$4 sm:$0xff]  }
 0x434   : > { %4466 = vmatprep.subr.bf16.mxu0 %v6295_v45  ;;  %4507 = vmatprep.subr.bf16.mxu1 %v6298_v46  ;;  %v6371_v44 = vld [vmem:[#allocation13 + $0x2e8] ss:$28 sps:$4 sm:$0xff]   ;;  %v6379_v46 = vld [vmem:[#allocation13 + $0x2b4] ss:$28 sps:$4 sm:$0xff]  }
 0x435   : > { %v6374_v45 = vld [vmem:[#allocation13 + $0x668] ss:$28 sps:$4 sm:$0xff]  }
 0x437   : > { %4467 = vmatpush2.bf16.msra.mxu0 %v6293_v48  ;;  %4508 = vmatpush2.bf16.msra.mxu1 %v6296_v49  ;;  %v6382_v48 = vld [vmem:[#allocation13 + $0x634] ss:$28 sps:$4 sm:$0xff]  }
 0x438   : > { %4468 = vmatprep.subr.bf16.mxu0 %v6301_v50  ;;  %4509 = vmatprep.subr.bf16.mxu1 %v6304_v54  ;;  %v6377_v49 = vld [vmem:[#allocation13 + $0x2b0] ss:$28 sps:$4 sm:$0xff]   ;;  %v6385_v54 = vld [vmem:[#allocation13 + $0x27c] ss:$28 sps:$4 sm:$0xff]  }
 0x439   : > { %v6380_v50 = vld [vmem:[#allocation13 + $0x630] ss:$28 sps:$4 sm:$0xff]  }
 0x43b   : > { %4469 = vmatpush2.bf16.msra.mxu0 %v6299_v55  ;;  %4510 = vmatpush2.bf16.msra.mxu1 %v6302_v58  ;;  %v6388_v55 = vld [vmem:[#allocation13 + $0x5fc] ss:$28 sps:$4 sm:$0xff]  }
 0x43c   : > { %4470 = vmatprep.subr.bf16.mxu0 %v6307_v59  ;;  %4511 = vmatprep.subr.bf16.mxu1 %v6310_v60  ;;  %v6383_v58 = vld [vmem:[#allocation13 + $0x278] ss:$28 sps:$4 sm:$0xff]   ;;  %v6391_v60 = vld [vmem:[#allocation13 + $0x244] ss:$28 sps:$4 sm:$0xff]  }
 0x43d   : > { %v6386_v59 = vld [vmem:[#allocation13 + $0x5f8] ss:$28 sps:$4 sm:$0xff]  }
 0x43f   : > { %4471 = vmatpush2.bf16.msra.mxu0 %v6305_v61  ;;  %4512 = vmatpush2.bf16.msra.mxu1 %v6308_v62  ;;  %v6394_v61 = vld [vmem:[#allocation13 + $0x5c4] ss:$28 sps:$4 sm:$0xff]  }
 0x440   : > { %4522 = vmatprep.subr.bf16.mxu0 %v6313_v47  ;;  %4563 = vmatprep.subr.bf16.mxu1 %v6316_v63  ;;  %v6389_v62 = vld [vmem:[#allocation13 + $0x240] ss:$28 sps:$4 sm:$0xff]   ;;  %v6397_v63 = vld [vmem:[#allocation13 + $0x20c] ss:$28 sps:$4 sm:$0xff]  }
 0x441   : > { %v6392_v47 = vld [vmem:[#allocation13 + $0x5c0] ss:$28 sps:$4 sm:$0xff]  }
 0x442   : > { %4473 = vmatmul.mubr.bf16.vlgmr.msra.gmra.mxu0 %v7145_v56  ;;  %4514 = vmatmul.mubr.bf16.vlgmr.msra.gmra.mxu1 %v7147_v57 }
 0x443   : > { %4523 = vmatpush1.bf16.msra.mxu0 %v6311_v15  ;;  %4554 = vmatprep.mubr.bf16.mxu0 %v7141_v52  ;;  %v6400_v15 = vld [vmem:[#allocation13 + $0x58c] ss:$28 sps:$4 sm:$0xff]  }
 0x444   : > { %4564 = vmatpush1.bf16.msra.mxu1 %v6314_v0  ;;  %4595 = vmatprep.mubr.bf16.mxu1 %v7143_v53  ;;  %v6395_v0 = vld [vmem:[#allocation13 + $0x208] ss:$28 sps:$4 sm:$0xff]  }
 0x445   : > { %4524 = vmatprep.subr.bf16.mxu0 %v6319_v2  ;;  %4565 = vmatprep.subr.bf16.mxu1 %v6322_v3  ;;  %v6398_v2 = vld [vmem:[#allocation13 + $0x588] ss:$28 sps:$4 sm:$0xff]   ;;  %v6403_v3 = vld [vmem:[#allocation13 + $0x1d4] ss:$28 sps:$4 sm:$0xff]  }
 0x447   : > { %4525 = vmatpush1.bf16.msra.mxu0 %v6317_v4  ;;  %v6406_v4 = vld [vmem:[#allocation13 + $0x554] ss:$28 sps:$4 sm:$0xff]  }
 0x448   : > { %4566 = vmatpush1.bf16.msra.mxu1 %v6320_v35  ;;  %4526 = vmatprep.subr.bf16.mxu0 %v6325_v5  ;;  %v6401_v35 = vld [vmem:[#allocation13 + $0x1d0] ss:$28 sps:$4 sm:$0xff]  }
 0x449   : > { %4567 = vmatprep.subr.bf16.mxu1 %v6328_v8  ;;  %v6404_v5 = vld [vmem:[#allocation13 + $0x550] ss:$28 sps:$4 sm:$0xff]   ;;  %v6407_v8 = vld [vmem:[#allocation13 + $0x360] ss:$28 sps:$4 sm:$0xff]  }
 0x44b   : > { %4527 = vmatpush1.bf16.msra.mxu0 %v6323_v9  ;;  %v6408_v9 = vld [vmem:[#allocation13 + $0x6e0] ss:$28 sps:$4 sm:$0xff]  }
 0x44c   : > { %4568 = vmatpush1.bf16.msra.mxu1 %v6326_v10  ;;  %4528 = vmatprep.subr.bf16.mxu0 %v6331_v11  ;;  %v6409_v10 = vld [vmem:[#allocation13 + $0x1a0] ss:$28 sps:$4 sm:$0xff]  }
 0x44d   : > { %4569 = vmatprep.subr.bf16.mxu1 %v6334_v12  ;;  %v6410_v11 = vld [vmem:[#allocation13 + $0x520] ss:$28 sps:$4 sm:$0xff]   ;;  %v6411_v12 = vld [vmem:[#allocation13 + $0x328] ss:$28 sps:$4 sm:$0xff]  }
 0x44f   : > { %4529 = vmatpush1.bf16.msra.mxu0 %v6329_v13  ;;  %v6412_v13 = vld [vmem:[#allocation13 + $0x6a8] ss:$28 sps:$4 sm:$0xff]  }
 0x450   : > { %4570 = vmatpush1.bf16.msra.mxu1 %v6332_v14  ;;  %4530 = vmatprep.subr.bf16.mxu0 %v6337_v17  ;;  %v6413_v14 = vld [vmem:[#allocation13 + $0x168] ss:$28 sps:$4 sm:$0xff]  }
 0x451   : > { %4571 = vmatprep.subr.bf16.mxu1 %v6340_v18  ;;  %v6414_v17 = vld [vmem:[#allocation13 + $0x4e8] ss:$28 sps:$4 sm:$0xff]   ;;  %v6415_v18 = vld [vmem:[#allocation13 + $0x2f0] ss:$28 sps:$4 sm:$0xff]  }
 0x453   : > { %4531 = vmatpush1.bf16.msra.mxu0 %v6335_v19  ;;  %v6416_v19 = vld [vmem:[#allocation13 + $0x670] ss:$28 sps:$4 sm:$0xff]  }
 0x454   : > { %4572 = vmatpush1.bf16.msra.mxu1 %v6338_v20  ;;  %4532 = vmatprep.subr.bf16.mxu0 %v6343_v21  ;;  %v6417_v20 = vld [vmem:[#allocation13 + $0x130] ss:$28 sps:$4 sm:$0xff]  }
 0x455   : > { %4573 = vmatprep.subr.bf16.mxu1 %v6346_v22  ;;  %v6418_v21 = vld [vmem:[#allocation13 + $0x4b0] ss:$28 sps:$4 sm:$0xff]   ;;  %v6419_v22 = vld [vmem:[#allocation13 + $0x2b8] ss:$28 sps:$4 sm:$0xff]  }
 0x457   : > { %4533 = vmatpush1.bf16.msra.mxu0 %v6341_v23  ;;  %v6420_v23 = vld [vmem:[#allocation13 + $0x638] ss:$28 sps:$4 sm:$0xff]  }
 0x458   : > { %4574 = vmatpush1.bf16.msra.mxu1 %v6344_v24  ;;  %4534 = vmatprep.subr.bf16.mxu0 %v6349_v25  ;;  %v6421_v24 = vld [vmem:[#allocation13 + $0xf8] ss:$28 sps:$4 sm:$0xff]   ;;  %v6423_v25 = vld [vmem:[#allocation13 + $0x280] ss:$28 sps:$4 sm:$0xff]  }
 0x459   : > { %4575 = vmatprep.subr.bf16.mxu1 %v6352_v26  ;;  %v6424_v26 = vld [vmem:[#allocation13 + $0x600] ss:$28 sps:$4 sm:$0xff]  }
 0x45b   : > { %4535 = vmatpush1.bf16.msra.mxu0 %v6347_v27  ;;  %v6426_v27 = vld [vmem:[#allocation13 + $0x440] ss:$28 sps:$4 sm:$0xff]  }
 0x45c   : > { %4576 = vmatpush1.bf16.msra.mxu1 %v6350_v28  ;;  %4536 = vmatprep.subr.bf16.mxu0 %v6355_v32  ;;  %v6427_v28 = vld [vmem:[#allocation13 + $0x248] ss:$28 sps:$4 sm:$0xff]  }
 0x45d   : > { %4577 = vmatprep.subr.bf16.mxu1 %v6358_v29  ;;  %v6428_v32 = vld [vmem:[#allocation13 + $0x5c8] ss:$28 sps:$4 sm:$0xff]  }
 0x45e   : > { %v6429_v29 = vld [vmem:[#allocation13 + $0x88] ss:$28 sps:$4 sm:$0xff]  }
 0x45f   : > { %4537 = vmatpush1.bf16.msra.mxu0 %v6353_v30  ;;  %v6430_v30 = vld [vmem:[#allocation13 + $0x408] ss:$28 sps:$4 sm:$0xff]  }
 0x460   : > { %4578 = vmatpush1.bf16.msra.mxu1 %v6356_v31  ;;  %4538 = vmatprep.subr.bf16.mxu0 %v6361_v7  ;;  %v6431_v31 = vld [vmem:[#allocation13 + $0x210] ss:$28 sps:$4 sm:$0xff]  }
 0x461   : > { %4579 = vmatprep.subr.bf16.mxu1 %v6364_v36  ;;  %v6432_v7 = vld [vmem:[#allocation13 + $0x590] ss:$28 sps:$4 sm:$0xff]  }
 0x462   : > { %v6433_v36 = vld [vmem:[#allocation13 + $0x50] ss:$28 sps:$4 sm:$0xff]  }
 0x463   : > { %4539 = vmatpush2.bf16.msra.mxu0 %v6359_v37  ;;  %v6434_v37 = vld [vmem:[#allocation13 + $0x3d0] ss:$28 sps:$4 sm:$0xff]  }
 0x464   : > { %4580 = vmatpush2.bf16.msra.mxu1 %v6362_v38  ;;  %4540 = vmatprep.subr.bf16.mxu0 %v6367_v39  ;;  %v6435_v38 = vld [vmem:[#allocation13 + $0x1d8] ss:$28 sps:$4 sm:$0xff]  }
 0x465   : > { %4581 = vmatprep.subr.bf16.mxu1 %v6370_v40  ;;  %v6436_v39 = vld [vmem:[#allocation13 + $0x558] ss:$28 sps:$4 sm:$0xff]  }
 0x466   : > { %v6437_v40 = vld [vmem:[#allocation13 + $0x18] ss:$28 sps:$4 sm:$0xff]  }
 0x467   : > { %4541 = vmatpush2.bf16.msra.mxu0 %v6365_v41  ;;  %v6438_v41 = vld [vmem:[#allocation13 + $0x398] ss:$28 sps:$4 sm:$0xff]  }
 0x468   : > { %4582 = vmatpush2.bf16.msra.mxu1 %v6368_v16  ;;  %4542 = vmatprep.subr.bf16.mxu0 %v6373_v42  ;;  %v7168_v16 = vld [vmem:[%s7263_s9] sm:$0xff] }
 0x469   : > { %4583 = vmatprep.subr.bf16.mxu1 %v6376_v43  ;;  %v3174_v42 = vrot.slane %v7168_v16, %v7108_v51  ;;  %v3178_v43 = vrot.slane %v7168_v16, %v7114_v34 }
 0x46b   : > { %4543 = vmatpush2.bf16.msra.mxu0 %v6371_v44 }
 0x46c   : > { %4584 = vmatpush2.bf16.msra.mxu1 %v6374_v45  ;;  %4544 = vmatprep.subr.bf16.mxu0 %v6379_v46 }
 0x46d   : > { %4585 = vmatprep.subr.bf16.mxu1 %v6382_v48 }
 0x46f   : > { %4545 = vmatpush2.bf16.msra.mxu0 %v6377_v49 }
 0x470   : > { %4586 = vmatpush2.bf16.msra.mxu1 %v6380_v50  ;;  %4546 = vmatprep.subr.bf16.mxu0 %v6385_v54 }
 0x471   : > { %4587 = vmatprep.subr.bf16.mxu1 %v6388_v55 }
 0x473   : > { %4547 = vmatpush2.bf16.msra.mxu0 %v6383_v58 }
 0x474   : > { %4588 = vmatpush2.bf16.msra.mxu1 %v6386_v59  ;;  %4548 = vmatprep.subr.bf16.mxu0 %v6391_v60 }
 0x475   : > { %4589 = vmatprep.subr.bf16.mxu1 %v6394_v61 }
 0x477   : > { %4549 = vmatpush2.bf16.msra.mxu0 %v6389_v62 }
 0x478   : > { %4590 = vmatpush2.bf16.msra.mxu1 %v6392_v47  ;;  %4550 = vmatprep.subr.bf16.mxu0 %v6397_v63 }
 0x479   : > { %4591 = vmatprep.subr.bf16.mxu1 %v6400_v15 }
 0x47b   : > { %4551 = vmatpush2.bf16.msra.mxu0 %v6395_v0  ;;  %v3182_v0 = vrot.slane %v7168_v16, %v7120_v6 }
 0x47c   : > { %4592 = vmatpush2.bf16.msra.mxu1 %v6398_v2  ;;  %4552 = vmatprep.subr.bf16.mxu0 %v6403_v3  ;;  %v3186_v2 = vrot.slane %v7168_v16, %v7123_v1 }
 0x47d   : > { %4593 = vmatprep.subr.bf16.mxu1 %v6406_v4 }
 0x47f   : > { %4553 = vmatpush2.bf16.msra.mxu0 %v6401_v35 }
 0x480   : > { %4594 = vmatpush2.bf16.msra.mxu1 %v6404_v5  ;;  %5533 = vmatprep.subr.bf16.mxu0 %v6407_v8 }
 0x481   : > { %5555 = vmatprep.subr.bf16.mxu1 %v6408_v9 }
 0x482   : > { %4555 = vmatmul.mubr.bf16.vlgmr.msra.gmra.mxu0 %v7145_v56 }
 0x483   : > { %4596 = vmatmul.mubr.bf16.vlgmr.msra.gmra.mxu1 %v7147_v57  ;;  %5534 = vmatpush3.bf16.msra.mxu0 %v6409_v10 }
 0x484   : > { %4636 = vmatprep.mubr.bf16.mxu0 %v7141_v52  ;;  %5556 = vmatpush3.bf16.msra.mxu1 %v6410_v11  ;;  %v6422_v52 = vld [vmem:[#allocation13 + $0x478] ss:$28 sps:$4 sm:$0xff]  }
 0x485   : > { %4676 = vmatprep.mubr.bf16.mxu1 %v7143_v53  ;;  %5535 = vmatprep.subr.bf16.mxu0 %v6411_v12  ;;  %v6425_v53 = vld [vmem:[#allocation13 + $0xc0] ss:$28 sps:$4 sm:$0xff]  }
 0x486   : > { %5557 = vmatprep.subr.bf16.mxu1 %v6412_v13 }
 0x487   : > { %5536 = vmatpush3.bf16.msra.mxu0 %v6413_v14 }
 0x488   : > { %5558 = vmatpush3.bf16.msra.mxu1 %v6414_v17  ;;  %5537 = vmatprep.subr.bf16.mxu0 %v6415_v18 }
 0x489   : > { %5559 = vmatprep.subr.bf16.mxu1 %v6416_v19 }
 0x48b   : > { %5538 = vmatpush3.bf16.msra.mxu0 %v6417_v20 }
 0x48c   : > { %5560 = vmatpush3.bf16.msra.mxu1 %v6418_v21  ;;  %5539 = vmatprep.subr.bf16.mxu0 %v6419_v22 }
 0x48d   : > { %5561 = vmatprep.subr.bf16.mxu1 %v6420_v23 }
 0x48f   : > { %5540 = vmatpush3.bf16.msra.mxu0 %v6421_v24 }
 0x490   : > { %5562 = vmatpush3.bf16.msra.mxu1 %v6422_v52  ;;  %5541 = vmatprep.subr.bf16.mxu0 %v6423_v25 }
 0x491   : > { %5563 = vmatprep.subr.bf16.mxu1 %v6424_v26 }
 0x493   : > { %5542 = vmatpush3.bf16.msra.mxu0 %v6425_v53 }
 0x494   : > { %5564 = vmatpush3.bf16.msra.mxu1 %v6426_v27  ;;  %5543 = vmatprep.subr.bf16.mxu0 %v6427_v28 }
 0x495   : > { %5565 = vmatprep.subr.bf16.mxu1 %v6428_v32 }
 0x497   : > { %5544 = vmatpush3.bf16.msra.mxu0 %v6429_v29 }
 0x498   : > { %5566 = vmatpush3.bf16.msra.mxu1 %v6430_v30  ;;  %5545 = vmatprep.subr.bf16.mxu0 %v6431_v31 }
 0x499   : > { %5567 = vmatprep.subr.bf16.mxu1 %v6432_v7 }
 0x49b   : > { %5546 = vmatpush3.bf16.msra.mxu0 %v6433_v36 }
 0x49c   : > { %5568 = vmatpush3.bf16.msra.mxu1 %v6434_v37  ;;  %5547 = vmatprep.subr.bf16.mxu0 %v6435_v38 }
 0x49d   : > { %5569 = vmatprep.subr.bf16.mxu1 %v6436_v39 }
 0x49f   : > { %5548 = vmatpush3.bf16.msra.mxu0 %v6437_v40 }
 0x4a0   : > { %5570 = vmatpush3.bf16.msra.mxu1 %v6438_v41 }
 0x4a2   : > { %4637 = vmatmul.mubr.bf16.vlgmr.msra.gmra.mxu0 %v7145_v56 }
 0x4a3   : > { %4677 = vmatmul.mubr.bf16.vlgmr.msra.gmra.mxu1 %v7147_v57 }
 0x4c2   : > { %v4392_v44 = vpop.f32.mrf.mxu0  ;;  %v4433_v45 = vpop.f32.mrf.mxu1 }
 0x4c3   : > { %v4393_v46 = vadd.f32 %v4392_v44, %v3174_v42 }
 0x4c4   : > { %v4394_v48 = vpop.f32.mrf.mxu0  ;;  %v4435_v49 = vpop.f32.mrf.mxu1 }
 0x4c5   : > { %v4434_v50 = vadd.f32 %v4433_v45, %v4393_v46  ;;  %v4395_v56 = vadd.f32 %v4394_v48, %v3178_v43 }
 0x4c6   : > { %v4396_v57 = vpop.f32.mrf.mxu0  ;;  %v4437_v54 = vpop.f32.mrf.mxu1 }
 0x4c7   : > { %v5477_v55 = vmul.f32 -1.442695, %v4434_v50  ;;  %v4436_v58 = vadd.f32 %v4435_v49, %v4395_v56 }
 0x4c8   : > { %v4397_v59 = vpop.f32.mrf.mxu0  ;;  %v4438_v60 = vpop.f32.mrf.mxu1 }
 0x4c9   : > { %6441 = vpow2.f32 %v5477_v55  ;;  %v5478_v61 = vmul.f32 -1.442695, %v4436_v58 }
 0x4cb   : > { %6443 = vpow2.f32 %v5478_v61 }
 0x4d6   : > { %v6442_v51 = vpop.eup %6441 }
 0x4d7   : > { %v4705_v62 = vadd.f32 1.0, %v6442_v51 }
 0x4d8   : > { %v6444_v34 = vpop.eup %6443 }
 0x4d9   : > { %6445 = vrcp.f32 %v4705_v62  ;;  %v4706_v47 = vadd.f32 1.0, %v6444_v34 }
 0x4db   : > { %6447 = vrcp.f32 %v4706_v47 }
 0x4e6   : > { %v6446_v63 = vpop.eup %6445 }
 0x4e7   : > { %4726 = vst [vmem:[%s7175_s21] sm:$0xff] %v6446_v63 }
 0x4e8   : > { %v6448_v15 = vpop.eup %6447 }
 0x4e9   : > { %4727 = vst [vmem:[%s7175_s21 + $0x8] sm:$0xff] %v6448_v15 }
 0x502   : > { %v4474_v3 = vpop.f32.mrf.mxu0  ;;  %v4515_v4 = vpop.f32.mrf.mxu1 }
 0x503   : > { %v4475_v35 = vadd.f32 %v4474_v3, %v3182_v0 }
 0x504   : > { %v4476_v5 = vpop.f32.mrf.mxu0  ;;  %v4517_v8 = vpop.f32.mrf.mxu1 }
 0x505   : > { %v4516_v9 = vadd.f32 %v4515_v4, %v4475_v35  ;;  %v4477_v10 = vadd.f32 %v4476_v5, %v3186_v2 }
 0x506   : > { %v4478_v11 = vpop.f32.mrf.mxu0  ;;  %v4519_v12 = vpop.f32.mrf.mxu1 }
 0x507   : > { %v5479_v13 = vmul.f32 -1.442695, %v4516_v9  ;;  %v4518_v14 = vadd.f32 %v4517_v8, %v4477_v10 }
 0x508   : > { %v4479_v17 = vpop.f32.mrf.mxu0  ;;  %v4520_v6 = vpop.f32.mrf.mxu1 }
 0x509   : > { %6449 = vpow2.f32 %v5479_v13  ;;  %v5480_v18 = vmul.f32 -1.442695, %v4518_v14 }
 0x50b   : > { %6451 = vpow2.f32 %v5480_v18 }
 0x50c   : > { %6669 = shalt.err (!%p6666_p8)
}
 0x50d   : > { %s6670_s14 = scalar_lea.hbm %s4764_s12, 128  ;;  %s6674_s25 = scalar_lea.hbm %s7265_s11, 256 }
 0x50e   : > { %p6671_p5 = scmp.ne.s32.totalorder %s4764_s12, %s6670_s14  ;;  %p6675_p2 = scmp.lt.s32.totalorder %s4764_s12, %s7265_s11 }
 0x50f   : > { %p6676_p10 = scmp.lt.s32.totalorder %s6674_s25, %s6670_s14 }
 0x510   : > { %p6672_p12 = pnand %p6671_p5, %p7299_p13 }
 0x511   : > { %p6677_p11 = por %p6676_p10, %p6675_p2 }
 0x512   : > { %p6673_p6 = pneg %p6672_p12 }
 0x514   : > { %p6678_p0 = pnand %p6677_p11, %p6673_p6 }
 0x516   : > { %6681 = shalt.err (!%p6678_p0)
}
 0x517   : > { %5607 = dma.vmem_to_hbm [thread:$0]  (%p7299_p13), %s4767_s6, 128, %s4764_s12, %s4739_s2   ;;  %v6450_v1 = vpop.eup %6449  ;;  %v3189_v24 = vsub.s32 4, %v7105_v33  ;;  %v3193_v52 = vsub.s32 5, %v7105_v33  ;;  %v3197_v46 = vsub.s32 6, %v7105_v33 }
 0x518   : > { %v4707_v19 = vadd.f32 1.0, %v6450_v1  ;;  %v6452_v20 = vpop.eup %6451  ;;  %s5581_s6 = smul.u32 896, %s6865_s23  ;;  %s4753_s24 = sshll.u32 %s7175_s21, 4  ;;  %s4754_s24 = int_to_ptr.vmem [resolvable:$true] %s4753_s24 }
 0x519   : > { %v4708_v21 = vadd.f32 1.0, %v6452_v20  ;;  %v3190_v25 = vrot.slane %v7168_v16, %v3189_v24  ;;  %v3194_v26 = vrot.slane %v7168_v16, %v3193_v52  ;;  %v3198_v50 = vrot.slane %v7168_v16, %v3197_v46  ;;  %s4734_s28 = scalar_lea.sflag [#allocation4], %s7037_s0  ;;  %s6682_s8 = scalar_lea.vmem %s4754_s24, 896 }
 0x51a   : > { %6453 = vrcp.f32 %v4707_v19  ;;  %s7216_s2 = scalar_lea.hbm %s7264_s10, %s5581_s6  ;;  %p6683_p7 = scmp.ne.s32.totalorder %s4754_s24, %s6682_s8 }
 0x51b   : > { %6455 = vrcp.f32 %v4708_v21  ;;  %s6783_s15 = smov [#allocation14]  }
 0x51c   : > { %p6684_p9 = pnand %p6683_p7, %p7299_p13  ;;  %s6686_s22 = sshll.u32 %s6783_s15, 4  ;;  %s6687_s22 = int_to_ptr.vmem [resolvable:$false] %s6686_s22 }
 0x51d   : > { %s6688_s14 = scalar_lea.vmem %s6687_s22, 1792  ;;  %p6689_p3 = scmp.lt.s32.totalorder %s4754_s24, %s6687_s22 }
 0x51e   : > { %p6685_p1 = pneg %p6684_p9  ;;  %p6690_p4 = scmp.lt.s32.totalorder %s6688_s14, %s6682_s8 }
 0x520   : > { %p6691_p8 = por %p6690_p4, %p6689_p3 }
 0x522   : > { %p6692_p5 = pnand %p6691_p8, %p6685_p1 }
 0x527   : > { %v6454_v22 = vpop.eup %6453 }
 0x528   : > { %4728 = vst [vmem:[%s7175_s21 + $0x10] sm:$0xff] %v6454_v22  ;;  %v6456_v23 = vpop.eup %6455 }
 0x529   : > { %4729 = vst [vmem:[%s7175_s21 + $0x18] sm:$0xff] %v6456_v23 }
 0x542   : > { %v4556_v53 = vpop.f32.mrf.mxu0 }
 0x543   : > { %v4557_v27 = vadd.f32 %v4556_v53, %v3190_v25  ;;  %v4597_v28 = vpop.f32.mrf.mxu1 }
 0x544   : > { %v4558_v32 = vpop.f32.mrf.mxu0 }
 0x545   : > { %v4598_v29 = vadd.f32 %v4597_v28, %v4557_v27  ;;  %v4559_v30 = vadd.f32 %v4558_v32, %v3194_v26  ;;  %v4599_v31 = vpop.f32.mrf.mxu1 }
 0x546   : > { %v4560_v7 = vpop.f32.mrf.mxu0 }
 0x547   : > { %v5481_v36 = vmul.f32 -1.442695, %v4598_v29  ;;  %v4600_v37 = vadd.f32 %v4599_v31, %v4559_v30  ;;  %v4601_v38 = vpop.f32.mrf.mxu1 }
 0x548   : > { %v4561_v39 = vpop.f32.mrf.mxu0 }
 0x549   : > { %6457 = vpow2.f32 %v5481_v36  ;;  %v5482_v40 = vmul.f32 -1.442695, %v4600_v37  ;;  %v4602_v41 = vpop.f32.mrf.mxu1 }
 0x54b   : > { %6459 = vpow2.f32 %v5482_v40 }
 0x556   : > { %v6458_v42 = vpop.eup %6457 }
 0x557   : > { %v4709_v43 = vadd.f32 1.0, %v6458_v42 }
 0x558   : > { %v6460_v44 = vpop.eup %6459 }
 0x559   : > { %6461 = vrcp.f32 %v4709_v43  ;;  %v4710_v45 = vadd.f32 1.0, %v6460_v44 }
 0x55b   : > { %6463 = vrcp.f32 %v4710_v45 }
 0x562   : > { %v5549_v48 = vpop.f32.mrf.mxu0 }
 0x563   : > { %v5571_v49 = vpop.f32.mrf.mxu1 }
 0x564   : > { %v5550_v56 = vpop.f32.mrf.mxu0 }
 0x565   : > { %v5551_v57 = vadd.f32 %v5550_v56, %v5549_v48  ;;  %v5572_v54 = vpop.f32.mrf.mxu1 }
 0x566   : > { %v6462_v55 = vpop.eup %6461  ;;  %v5552_v58 = vpop.f32.mrf.mxu0  ;;  %v5573_v60 = vadd.f32 %v5572_v54, %v5571_v49 }
 0x567   : > { %v4639_v59 = vadd.f32 %v5551_v57, %v3198_v50  ;;  %v5574_v61 = vpop.f32.mrf.mxu1  ;;  %4730 = vst [vmem:[%s7175_s21 + $0x20] sm:$0xff] %v6462_v55 }
 0x568   : > { %v6464_v51 = vpop.eup %6463  ;;  %v5553_v33 = vpop.f32.mrf.mxu0 }
 0x569   : > { %v4679_v62 = vadd.f32 %v5573_v60, %v4639_v59  ;;  %v5575_v34 = vpop.f32.mrf.mxu1  ;;  %4731 = vst [vmem:[%s7175_s21 + $0x28] sm:$0xff] %v6464_v51 }
 0x56b   : > { %v5483_v16 = vmul.f32 -1.442695, %v4679_v62 }
 0x56d   : > { %6465 = vpow2.f32 %v5483_v16 }
 0x57a   : > { %v6466_v47 = vpop.eup %6465 }
 0x57b   : > { %v4711_v63 = vadd.f32 1.0, %v6466_v47 }
 0x57d   : > { %6467 = vrcp.f32 %v4711_v63 }
 0x58a   : > { %v6468_v15 = vpop.eup %6467 }
 0x58b   : > { %4732 = vst [vmem:[%s7175_s21 + $0x30] sm:$0xff] %v6468_v15 }
 0x58c   : > { %6695 = shalt.err (!%p6692_p5)
}
 0x58d   : > { %s6696_s23 = scalar_lea.hbm %s7216_s2, 896  ;;  %s6700_s7 = scalar_lea.hbm %s7264_s10, 1792 }
 0x58e   : > { %p6697_p12 = scmp.ne.s32.totalorder %s7216_s2, %s6696_s23  ;;  %p6701_p10 = scmp.lt.s32.totalorder %s7216_s2, %s7264_s10 }
 0x58f   : > { %p6702_p11 = scmp.lt.s32.totalorder %s6700_s7, %s6696_s23 }
 0x590   : > { %p6698_p6 = pnand %p6697_p12, %p7299_p13 }
 0x591   : > { %p6703_p0 = por %p6702_p11, %p6701_p10 }
 0x592   : > { %p6699_p2 = pneg %p6698_p6 }
 0x594   : > { %p6704_p7 = pnand %p6703_p0, %p6699_p2 }
 0x596   : > { %6707 = shalt.err (!%p6704_p7)
}
 0x597   : > { %5606 = dma.vmem_to_hbm [thread:$0]  (%p7299_p13), %s4754_s24, 896, %s7216_s2, %s4734_s28  }
 0x598 PF: > { %s4778_s27 = sand.u32 1, %s6754_s17   ;;  %p7300_p9 = scmp.ne.s32.totalorder %s7287_s16, 0 }
 0x599   : > { %p7301_p1 = scmp.ge.s32.totalorder %s6766_s20, 2  ;;  %s4779_s4 = scalar_lea.sflag [#allocation4], %s4778_s27 }
 0x59b   : > { %p5634_p3 = pnand %p7301_p1, %p7300_p9 }
 0x59d   : > { %p5635_p4 = pneg %p5634_p3 }
 0x59f   : > { %6745 = dma.done.wait (%p5635_p4), %s4779_s4, 896  }
 0x5a0   : > { %6747 = vsyncadd (%p5635_p4), %s4779_s4, 4294966400  ;;  %s4788_s6 = scalar_lea.sflag [#allocation16], %s4778_s27 }
 0x5a1   : > { %6749 = dma.done.wait (%p5635_p4), %s4788_s6, 128  }
 0x5a2   : > { %6751 = vsyncadd (%p5635_p4), %s4788_s6, 4294967168  ;;  %s7302_s29 = sld [smem:[#allocation24_spill]]  ;;  %p33_p13 = scmp.ge.s32.totalorder %s6942_s26, 4  }
 0x5a3   : > { %s7303_s17 = smov %s6758_s18  ;;  %s7304_s18 = smov %s6762_s19 }
 0x5a4   : > { %s7306_s20 = smov %s6942_s26  ;;  %35 = sbr.rel (!%p33_p13) target bundleno = 18 (0x12), region = 155 }
 0x5a8   : > { %s7305_s19 = smov %s7302_s29 }
 0x5a9   :  { %4793 = vsyncpa [#allocation3], 1 }
 0x5aa   :  { %4795 = vsyncpa [#allocation3 + $0x1], 1 }
 0x5ab   :  { %4796 = vsyncpa [#allocation6], 1 }
 0x5ac   :  { %4798 = vsyncpa [#allocation6 + $0x1], 1 }
 0x5ad   :  { %4799 = vsyncpa [#allocation9], 1 }
 0x5ae   :  { %4800 = vsyncpa [#allocation12], 1 }
 0x5af   :  { %4801 = vsyncpa [#allocation4], 1 }
 0x5b0   :  { %4803 = vsyncpa [#allocation4 + $0x1], 1 }
 0x5b1   :  { %4804 = vsyncpa [#allocation16], 1 }
 0x5b2   :  { %4806 = vsyncpa [#allocation16 + $0x1], 1 }

</bundles_post_ra>
